<compile_context>
chip_gen: v7x
topology: tpu7x:2x2x1
jax: 0.10.0
libtpu: 0.0.40
codegen_flags: <defaults>
</compile_context>

<pallas_src>
import functools
import math

import jax
import jax.numpy as jnp
from jax import lax
from jax.experimental import pallas as pl
from jax.experimental.pallas import tpu as pltpu

EPS = 1e-5  # PyTorch nn.LayerNorm default


def transformer_block_kernel(x_ref, w1_ref, w2_ref, masks_ref, pt_ref, p_ref,
                             g1_ref, be1_ref, g2_ref, be2_ref, o_ref, *, W):
    """One grid step == one image. x_ref: (1, Cin, HW); o_ref: (1, Cout, HW)."""
    xf = x_ref[0]                 # (Cin, HW) lane-dense slab
    masks = masks_ref[...]        # (9, HW) f32 border masks, precomputed
    pt = pt_ref[...]              # (HW, G)  group-mean weights (1/W inside groups)
    p = p_ref[...]                # (G, HW)  group->lane broadcast indicator

    _, N = xf.shape

    def im2col(z):
        # (C, HW) -> (9*C, HW); tap k=(dh,dw) via lane rotate (XLU) * border mask.
        # Roll wrap-around only touches lanes that the mask zeroes out.
        patches = []
        for k in range(9):
            dh, dw = k // 3 - 1, k % 3 - 1
            s = dh * W + dw
            shifted = pltpu.roll(z, shift=(-s) % N, axis=1)
            patches.append(shifted * masks[k:k + 1, :])
        return jnp.concatenate(patches, axis=0)

    def layernorm_relu(y, gamma, beta):
        # LayerNorm over groups of W consecutive lanes (the original W axis).
        C = y.shape[0]
        # One stacked (2C, N) @ (N, G) matmul for mean and mean-of-squares.
        stats_g = jnp.dot(jnp.concatenate([y, y * y], axis=0), pt,
                          preferred_element_type=jnp.float32)      # (2C, G)
        mean_g, meansq_g = stats_g[:C], stats_g[C:]
        var_g = meansq_g - mean_g * mean_g
        rstd_g = lax.rsqrt(var_g + EPS)
        # One stacked (2C, G) @ (G, N) matmul broadcasting mean & rstd back.
        bcast = jnp.dot(jnp.concatenate([mean_g, rstd_g], axis=0), p,
                        preferred_element_type=jnp.float32)        # (2C, N)
        mean, rstd = bcast[:C], bcast[C:]
        return jnp.maximum((y - mean) * rstd * gamma + beta, 0.0)

    # conv1 as one fused im2col matmul; conv bias is cancelled by the LN mean.
    y1 = jnp.dot(w1_ref[...], im2col(xf), preferred_element_type=jnp.float32)
    h1 = layernorm_relu(y1, g1_ref[...], be1_ref[...])

    # conv2
    y2 = jnp.dot(w2_ref[...], im2col(h1), preferred_element_type=jnp.float32)
    h2 = layernorm_relu(y2, g2_ref[...], be2_ref[...])

    # residual add (nearest-interp to identical size == identity); full-width store.
    o_ref[0] = (h2 + xf).astype(o_ref.dtype)


@jax.jit
def transformer_block(x, w1, b1, g1, be1, w2, b2, g2, be2):
    B, Cin, H, W = x.shape
    Cout = w1.shape[0]
    HW = H * W

    # Module-implied constraints (forward would not run in PyTorch otherwise):
    # nn.LayerNorm(out_channels) on NCHW normalizes the last (W) axis.
    assert W == Cout, "LayerNorm(out_channels) on NCHW requires W == out_channels"
    assert Cin == Cout, "residual add requires in_channels == out_channels"

    # Weight prep: (O, I, 3, 3) -> (O, 9*I); tap index k = kh*3+kw is the slow
    # axis, input channel the fast axis (matches in-kernel im2col stacking).
    w1f = jnp.transpose(w1, (0, 2, 3, 1)).reshape(Cout, 9 * Cin)
    w2f = jnp.transpose(w2, (0, 2, 3, 1)).reshape(Cout, 9 * Cout)
    # Per-channel conv bias is constant over the LN axis -> exactly cancelled by
    # the LN mean subtraction (valid only under the W == out_channels constraint).
    del b1, b2

    # 9 zero-padding border masks, one per tap, precomputed on host/XLA side.
    lane = jnp.arange(HW, dtype=jnp.int32)
    hh = lane // W
    ww = lane % W
    mask_rows = []
    for k in range(9):
        dh, dw = k // 3 - 1, k % 3 - 1
        valid = ((hh + dh >= 0) & (hh + dh < H) &
                 (ww + dw >= 0) & (ww + dw < W))
        mask_rows.append(valid.astype(jnp.float32))
    masks = jnp.stack(mask_rows, axis=0)                      # (9, HW)

    # Factored group reduction: G = H groups of W consecutive lanes.
    G = H
    gid = lane // W                                           # (HW,)
    P = (gid[None, :] == jnp.arange(G, dtype=jnp.int32)[:, None]
         ).astype(jnp.float32)                                # (G, HW)
    Pt = P.T * (1.0 / W)                                      # (HW, G) mean weights

    # LN affine params tiled over the image lane axis (period W).
    g1t = jnp.tile(g1, H).reshape(1, HW)
    be1t = jnp.tile(be1, H).reshape(1, HW)
    g2t = jnp.tile(g2, H).reshape(1, HW)
    be2t = jnp.tile(be2, H).reshape(1, HW)

    x3 = x.reshape(B, Cin, HW)  # contiguous, free

    kernel = functools.partial(transformer_block_kernel, W=W)
    out = pl.pallas_call(
        kernel,
        out_shape=jax.ShapeDtypeStruct((B, Cout, HW), x.dtype),
        grid=(B,),
        in_specs=[
            pl.BlockSpec((1, Cin, HW), lambda b: (b, 0, 0)),       # x (per image)
            pl.BlockSpec((Cout, 9 * Cin), lambda b: (0, 0)),       # w1
            pl.BlockSpec((Cout, 9 * Cout), lambda b: (0, 0)),      # w2
            pl.BlockSpec((9, HW), lambda b: (0, 0)),               # border masks
            pl.BlockSpec((HW, G), lambda b: (0, 0)),               # Pt
            pl.BlockSpec((G, HW), lambda b: (0, 0)),               # P
            pl.BlockSpec((1, HW), lambda b: (0, 0)),               # gamma1
            pl.BlockSpec((1, HW), lambda b: (0, 0)),               # beta1
            pl.BlockSpec((1, HW), lambda b: (0, 0)),               # gamma2
            pl.BlockSpec((1, HW), lambda b: (0, 0)),               # beta2
        ],
        out_specs=pl.BlockSpec((1, Cout, HW), lambda b: (b, 0, 0)),
        compiler_params=pltpu.CompilerParams(
            # batch axis is independent -> shardable across TensorCores (v7x).
            dimension_semantics=("parallel",)),
    )(x3, w1f, w2f, masks, Pt, P, g1t, be1t, g2t, be2t)
    return out.reshape(B, Cout, H, W)


def reference(x, w1, b1, g1, be1, w2, b2, g2, be2):
    """Pure-JAX reference mirroring the PyTorch forward (biases included)."""
    def conv(h, w, b):
        y = lax.conv_general_dilated(h, w, (1, 1), [(1, 1), (1, 1)],
                                     dimension_numbers=('NCHW', 'OIHW', 'NCHW'))
        return y + b[None, :, None, None]

    def ln(h, g, bt):
        mu = jnp.mean(h, -1, keepdims=True)
        var = jnp.mean((h - mu) ** 2, -1, keepdims=True)
        return (h - mu) / jnp.sqrt(var + EPS) * g + bt

    h = jax.nn.relu(ln(conv(x, w1, b1), g1, be1))
    h = jax.nn.relu(ln(conv(h, w2, b2), g2, be2))
    return h + x  # nearest interpolate to identical size is the identity


if __name__ == "__main__":
    # Module constraints: in_channels == out_channels (residual add) and
    # spatial W == out_channels (nn.LayerNorm(out_channels) on an NCHW tensor).
    B, Cin, Cout, H, W = 2, 16, 16, 16, 16

    key = jax.random.PRNGKey(0)
    kx, kw1, kb1, kw2, kb2 = jax.random.split(key, 5)
    x = jax.random.normal(kx, (B, Cin, H, W), jnp.float32)

    bound1 = 1.0 / math.sqrt(Cin * 9)
    w1 = jax.random.uniform(kw1, (Cout, Cin, 3, 3), jnp.float32, -bound1, bound1)
    b1 = jax.random.uniform(kb1, (Cout,), jnp.float32, -bound1, bound1)
    bound2 = 1.0 / math.sqrt(Cout * 9)
    w2 = jax.random.uniform(kw2, (Cout, Cout, 3, 3), jnp.float32, -bound2, bound2)
    b2 = jax.random.uniform(kb2, (Cout,), jnp.float32, -bound2, bound2)
    g1 = jnp.ones((Cout,), jnp.float32); be1 = jnp.zeros((Cout,), jnp.float32)
    g2 = jnp.ones((Cout,), jnp.float32); be2 = jnp.zeros((Cout,), jnp.float32)

    out = transformer_block(x, w1, b1, g1, be1, w2, b2, g2, be2)
    out = jax.block_until_ready(out)

    ref = reference(x, w1, b1, g1, be1, w2, b2, g2, be2)
    err = float(jnp.max(jnp.abs(out - ref)))
    assert out.shape == (B, Cout, H, W) and out.dtype == jnp.float32
    assert jnp.allclose(out, ref, rtol=1e-3, atol=1e-3), f"max abs err {err}"
    print("KERNEL_OK")
</pallas_src>

<mosaic_0001>
module attributes {stable_mosaic.version = 11 : i64} {
  func.func @transformer_block_kernel(%arg0: i32, %arg1: memref<1x16x256xf32, #tpu.memory_space<vmem>>, %arg2: memref<16x144xf32, #tpu.memory_space<vmem>>, %arg3: memref<16x144xf32, #tpu.memory_space<vmem>>, %arg4: memref<9x256xf32, #tpu.memory_space<vmem>>, %arg5: memref<256x16xf32, #tpu.memory_space<vmem>>, %arg6: memref<16x256xf32, #tpu.memory_space<vmem>>, %arg7: memref<1x256xf32, #tpu.memory_space<vmem>>, %arg8: memref<1x256xf32, #tpu.memory_space<vmem>>, %arg9: memref<1x256xf32, #tpu.memory_space<vmem>>, %arg10: memref<1x256xf32, #tpu.memory_space<vmem>>, %arg11: memref<1x16x256xf32, #tpu.memory_space<vmem>>) attributes {dimension_semantics = [#tpu.dimension_semantics<parallel>], iteration_bounds = array<i64: 2>, scalar_prefetch = 0 : i64, scratch_operands = 0 : i64, tpu.core_type = #tpu.core_type<tc>, window_params = [{transform_indices = @transform_0, window_bounds = array<i64: 1, 16, 256>}, {pipeline_mode = #tpu.pipeline_mode<synchronous>, transform_indices = @transform_1, window_bounds = array<i64: 16, 144>}, {pipeline_mode = #tpu.pipeline_mode<synchronous>, transform_indices = @transform_2, window_bounds = array<i64: 16, 144>}, {pipeline_mode = #tpu.pipeline_mode<synchronous>, transform_indices = @transform_3, window_bounds = array<i64: 9, 256>}, {pipeline_mode = #tpu.pipeline_mode<synchronous>, transform_indices = @transform_4, window_bounds = array<i64: 256, 16>}, {pipeline_mode = #tpu.pipeline_mode<synchronous>, transform_indices = @transform_5, window_bounds = array<i64: 16, 256>}, {pipeline_mode = #tpu.pipeline_mode<synchronous>, transform_indices = @transform_6, window_bounds = array<i64: 1, 256>}, {pipeline_mode = #tpu.pipeline_mode<synchronous>, transform_indices = @transform_7, window_bounds = array<i64: 1, 256>}, {pipeline_mode = #tpu.pipeline_mode<synchronous>, transform_indices = @transform_8, window_bounds = array<i64: 1, 256>}, {pipeline_mode = #tpu.pipeline_mode<synchronous>, transform_indices = @transform_9, window_bounds = array<i64: 1, 256>}, {transform_indices = @transform_10, window_bounds = array<i64: 1, 16, 256>}]} {
    %c0 = arith.constant 0 : index
    %c0_0 = arith.constant 0 : index
    %c0_1 = arith.constant 0 : index
    %0 = vector.load %arg1[%c0, %c0_0, %c0_1] : memref<1x16x256xf32, #tpu.memory_space<vmem>>, vector<1x16x256xf32>
    %1 = vector.shape_cast %0 : vector<1x16x256xf32> to vector<16x256xf32>
    %c0_2 = arith.constant 0 : index
    %c0_3 = arith.constant 0 : index
    %2 = vector.load %arg4[%c0_2, %c0_3] : memref<9x256xf32, #tpu.memory_space<vmem>>, vector<9x256xf32>
    %c0_4 = arith.constant 0 : index
    %c0_5 = arith.constant 0 : index
    %3 = vector.load %arg5[%c0_4, %c0_5] : memref<256x16xf32, #tpu.memory_space<vmem>>, vector<256x16xf32>
    %c0_6 = arith.constant 0 : index
    %c0_7 = arith.constant 0 : index
    %4 = vector.load %arg6[%c0_6, %c0_7] : memref<16x256xf32, #tpu.memory_space<vmem>>, vector<16x256xf32>
    %c0_8 = arith.constant 0 : index
    %c0_9 = arith.constant 0 : index
    %5 = vector.load %arg2[%c0_8, %c0_9] : memref<16x144xf32, #tpu.memory_space<vmem>>, vector<16x144xf32>
    %c17_i32 = arith.constant 17 : i32
    %6 = tpu.dynamic_rotate %1 by %c17_i32 dim 1 : vector<16x256xf32>, i32 -> vector<16x256xf32>
    %7 = vector.extract_strided_slice %2 {offsets = [0, 0], sizes = [1, 256], strides = [1, 1]} : vector<9x256xf32> to vector<1x256xf32>
    %8 = vector.broadcast %7 : vector<1x256xf32> to vector<16x256xf32>
    %9 = arith.mulf %6, %8 : vector<16x256xf32>
    %c16_i32 = arith.constant 16 : i32
    %10 = tpu.dynamic_rotate %1 by %c16_i32 dim 1 : vector<16x256xf32>, i32 -> vector<16x256xf32>
    %11 = vector.extract_strided_slice %2 {offsets = [1, 0], sizes = [1, 256], strides = [1, 1]} : vector<9x256xf32> to vector<1x256xf32>
    %12 = vector.broadcast %11 : vector<1x256xf32> to vector<16x256xf32>
    %13 = arith.mulf %10, %12 : vector<16x256xf32>
    %c15_i32 = arith.constant 15 : i32
    %14 = tpu.dynamic_rotate %1 by %c15_i32 dim 1 : vector<16x256xf32>, i32 -> vector<16x256xf32>
    %15 = vector.extract_strided_slice %2 {offsets = [2, 0], sizes = [1, 256], strides = [1, 1]} : vector<9x256xf32> to vector<1x256xf32>
    %16 = vector.broadcast %15 : vector<1x256xf32> to vector<16x256xf32>
    %17 = arith.mulf %14, %16 : vector<16x256xf32>
    %c1_i32 = arith.constant 1 : i32
    %18 = tpu.dynamic_rotate %1 by %c1_i32 dim 1 : vector<16x256xf32>, i32 -> vector<16x256xf32>
    %19 = vector.extract_strided_slice %2 {offsets = [3, 0], sizes = [1, 256], strides = [1, 1]} : vector<9x256xf32> to vector<1x256xf32>
    %20 = vector.broadcast %19 : vector<1x256xf32> to vector<16x256xf32>
    %21 = arith.mulf %18, %20 : vector<16x256xf32>
    %c0_i32 = arith.constant 0 : i32
    %22 = tpu.dynamic_rotate %1 by %c0_i32 dim 1 : vector<16x256xf32>, i32 -> vector<16x256xf32>
    %23 = vector.extract_strided_slice %2 {offsets = [4, 0], sizes = [1, 256], strides = [1, 1]} : vector<9x256xf32> to vector<1x256xf32>
    %24 = vector.broadcast %23 : vector<1x256xf32> to vector<16x256xf32>
    %25 = arith.mulf %22, %24 : vector<16x256xf32>
    %c255_i32 = arith.constant 255 : i32
    %26 = tpu.dynamic_rotate %1 by %c255_i32 dim 1 : vector<16x256xf32>, i32 -> vector<16x256xf32>
    %27 = vector.extract_strided_slice %2 {offsets = [5, 0], sizes = [1, 256], strides = [1, 1]} : vector<9x256xf32> to vector<1x256xf32>
    %28 = vector.broadcast %27 : vector<1x256xf32> to vector<16x256xf32>
    %29 = arith.mulf %26, %28 : vector<16x256xf32>
    %c241_i32 = arith.constant 241 : i32
    %30 = tpu.dynamic_rotate %1 by %c241_i32 dim 1 : vector<16x256xf32>, i32 -> vector<16x256xf32>
    %31 = vector.extract_strided_slice %2 {offsets = [6, 0], sizes = [1, 256], strides = [1, 1]} : vector<9x256xf32> to vector<1x256xf32>
    %32 = vector.broadcast %31 : vector<1x256xf32> to vector<16x256xf32>
    %33 = arith.mulf %30, %32 : vector<16x256xf32>
    %c240_i32 = arith.constant 240 : i32
    %34 = tpu.dynamic_rotate %1 by %c240_i32 dim 1 : vector<16x256xf32>, i32 -> vector<16x256xf32>
    %35 = vector.extract_strided_slice %2 {offsets = [7, 0], sizes = [1, 256], strides = [1, 1]} : vector<9x256xf32> to vector<1x256xf32>
    %36 = vector.broadcast %35 : vector<1x256xf32> to vector<16x256xf32>
    %37 = arith.mulf %34, %36 : vector<16x256xf32>
    %c239_i32 = arith.constant 239 : i32
    %38 = tpu.dynamic_rotate %1 by %c239_i32 dim 1 : vector<16x256xf32>, i32 -> vector<16x256xf32>
    %39 = vector.extract_strided_slice %2 {offsets = [8, 0], sizes = [1, 256], strides = [1, 1]} : vector<9x256xf32> to vector<1x256xf32>
    %40 = vector.broadcast %39 : vector<1x256xf32> to vector<16x256xf32>
    %41 = arith.mulf %38, %40 : vector<16x256xf32>
    %42 = tpu.concatenate %9, %13, %17, %21, %25, %29, %33, %37, %41 in 0 : vector<16x256xf32>, vector<16x256xf32>, vector<16x256xf32>, vector<16x256xf32>, vector<16x256xf32>, vector<16x256xf32>, vector<16x256xf32>, vector<16x256xf32>, vector<16x256xf32> -> vector<144x256xf32>
    %cst = arith.constant dense<0.000000e+00> : vector<16x256xf32>
    %43 = tpu.matmul %5, %42, %cst {dimension_numbers = #tpu.dot_dimension_numbers<[1], [0], [0], [1], [0, 0, 1, 1], [], []>} : vector<16x144xf32>, vector<144x256xf32>, vector<16x256xf32> -> vector<16x256xf32>
    %c0_10 = arith.constant 0 : index
    %c0_11 = arith.constant 0 : index
    %44 = vector.load %arg7[%c0_10, %c0_11] : memref<1x256xf32, #tpu.memory_space<vmem>>, vector<1x256xf32>
    %c0_12 = arith.constant 0 : index
    %c0_13 = arith.constant 0 : index
    %45 = vector.load %arg8[%c0_12, %c0_13] : memref<1x256xf32, #tpu.memory_space<vmem>>, vector<1x256xf32>
    %46 = arith.mulf %43, %43 : vector<16x256xf32>
    %47 = tpu.concatenate %43, %46 in 0 : vector<16x256xf32>, vector<16x256xf32> -> vector<32x256xf32>
    %cst_14 = arith.constant dense<0.000000e+00> : vector<32x16xf32>
    %48 = tpu.matmul %47, %3, %cst_14 {dimension_numbers = #tpu.dot_dimension_numbers<[1], [0], [0], [1], [0, 0, 1, 1], [], []>} : vector<32x256xf32>, vector<256x16xf32>, vector<32x16xf32> -> vector<32x16xf32>
    %49 = vector.extract_strided_slice %48 {offsets = [0, 0], sizes = [16, 16], strides = [1, 1]} : vector<32x16xf32> to vector<16x16xf32>
    %50 = vector.extract_strided_slice %48 {offsets = [16, 0], sizes = [16, 16], strides = [1, 1]} : vector<32x16xf32> to vector<16x16xf32>
    %51 = arith.mulf %49, %49 : vector<16x16xf32>
    %52 = arith.subf %50, %51 : vector<16x16xf32>
    %cst_15 = arith.constant 9.99999974E-6 : f32
    %53 = vector.broadcast %cst_15 : f32 to vector<16x16xf32>
    %54 = arith.addf %52, %53 : vector<16x16xf32>
    %55 = math.rsqrt %54 : vector<16x16xf32>
    %56 = tpu.concatenate %49, %55 in 0 : vector<16x16xf32>, vector<16x16xf32> -> vector<32x16xf32>
    %cst_16 = arith.constant dense<0.000000e+00> : vector<32x256xf32>
    %57 = tpu.matmul %56, %4, %cst_16 {dimension_numbers = #tpu.dot_dimension_numbers<[1], [0], [0], [1], [0, 0, 1, 1], [], []>} : vector<32x16xf32>, vector<16x256xf32>, vector<32x256xf32> -> vector<32x256xf32>
    %58 = vector.extract_strided_slice %57 {offsets = [0, 0], sizes = [16, 256], strides = [1, 1]} : vector<32x256xf32> to vector<16x256xf32>
    %59 = vector.extract_strided_slice %57 {offsets = [16, 0], sizes = [16, 256], strides = [1, 1]} : vector<32x256xf32> to vector<16x256xf32>
    %60 = arith.subf %43, %58 : vector<16x256xf32>
    %61 = arith.mulf %60, %59 : vector<16x256xf32>
    %62 = vector.broadcast %44 : vector<1x256xf32> to vector<16x256xf32>
    %63 = arith.mulf %61, %62 : vector<16x256xf32>
    %64 = vector.broadcast %45 : vector<1x256xf32> to vector<16x256xf32>
    %65 = arith.addf %63, %64 : vector<16x256xf32>
    %cst_17 = arith.constant 0.000000e+00 : f32
    %66 = vector.broadcast %cst_17 : f32 to vector<16x256xf32>
    %67 = arith.maximumf %65, %66 : vector<16x256xf32>
    %c0_18 = arith.constant 0 : index
    %c0_19 = arith.constant 0 : index
    %68 = vector.load %arg3[%c0_18, %c0_19] : memref<16x144xf32, #tpu.memory_space<vmem>>, vector<16x144xf32>
    %c17_i32_20 = arith.constant 17 : i32
    %69 = tpu.dynamic_rotate %67 by %c17_i32_20 dim 1 : vector<16x256xf32>, i32 -> vector<16x256xf32>
    %70 = vector.extract_strided_slice %2 {offsets = [0, 0], sizes = [1, 256], strides = [1, 1]} : vector<9x256xf32> to vector<1x256xf32>
    %71 = vector.broadcast %70 : vector<1x256xf32> to vector<16x256xf32>
    %72 = arith.mulf %69, %71 : vector<16x256xf32>
    %c16_i32_21 = arith.constant 16 : i32
    %73 = tpu.dynamic_rotate %67 by %c16_i32_21 dim 1 : vector<16x256xf32>, i32 -> vector<16x256xf32>
    %74 = vector.extract_strided_slice %2 {offsets = [1, 0], sizes = [1, 256], strides = [1, 1]} : vector<9x256xf32> to vector<1x256xf32>
    %75 = vector.broadcast %74 : vector<1x256xf32> to vector<16x256xf32>
    %76 = arith.mulf %73, %75 : vector<16x256xf32>
    %c15_i32_22 = arith.constant 15 : i32
    %77 = tpu.dynamic_rotate %67 by %c15_i32_22 dim 1 : vector<16x256xf32>, i32 -> vector<16x256xf32>
    %78 = vector.extract_strided_slice %2 {offsets = [2, 0], sizes = [1, 256], strides = [1, 1]} : vector<9x256xf32> to vector<1x256xf32>
    %79 = vector.broadcast %78 : vector<1x256xf32> to vector<16x256xf32>
    %80 = arith.mulf %77, %79 : vector<16x256xf32>
    %c1_i32_23 = arith.constant 1 : i32
    %81 = tpu.dynamic_rotate %67 by %c1_i32_23 dim 1 : vector<16x256xf32>, i32 -> vector<16x256xf32>
    %82 = vector.extract_strided_slice %2 {offsets = [3, 0], sizes = [1, 256], strides = [1, 1]} : vector<9x256xf32> to vector<1x256xf32>
    %83 = vector.broadcast %82 : vector<1x256xf32> to vector<16x256xf32>
    %84 = arith.mulf %81, %83 : vector<16x256xf32>
    %c0_i32_24 = arith.constant 0 : i32
    %85 = tpu.dynamic_rotate %67 by %c0_i32_24 dim 1 : vector<16x256xf32>, i32 -> vector<16x256xf32>
    %86 = vector.extract_strided_slice %2 {offsets = [4, 0], sizes = [1, 256], strides = [1, 1]} : vector<9x256xf32> to vector<1x256xf32>
    %87 = vector.broadcast %86 : vector<1x256xf32> to vector<16x256xf32>
    %88 = arith.mulf %85, %87 : vector<16x256xf32>
    %c255_i32_25 = arith.constant 255 : i32
    %89 = tpu.dynamic_rotate %67 by %c255_i32_25 dim 1 : vector<16x256xf32>, i32 -> vector<16x256xf32>
    %90 = vector.extract_strided_slice %2 {offsets = [5, 0], sizes = [1, 256], strides = [1, 1]} : vector<9x256xf32> to vector<1x256xf32>
    %91 = vector.broadcast %90 : vector<1x256xf32> to vector<16x256xf32>
    %92 = arith.mulf %89, %91 : vector<16x256xf32>
    %c241_i32_26 = arith.constant 241 : i32
    %93 = tpu.dynamic_rotate %67 by %c241_i32_26 dim 1 : vector<16x256xf32>, i32 -> vector<16x256xf32>
    %94 = vector.extract_strided_slice %2 {offsets = [6, 0], sizes = [1, 256], strides = [1, 1]} : vector<9x256xf32> to vector<1x256xf32>
    %95 = vector.broadcast %94 : vector<1x256xf32> to vector<16x256xf32>
    %96 = arith.mulf %93, %95 : vector<16x256xf32>
    %c240_i32_27 = arith.constant 240 : i32
    %97 = tpu.dynamic_rotate %67 by %c240_i32_27 dim 1 : vector<16x256xf32>, i32 -> vector<16x256xf32>
    %98 = vector.extract_strided_slice %2 {offsets = [7, 0], sizes = [1, 256], strides = [1, 1]} : vector<9x256xf32> to vector<1x256xf32>
    %99 = vector.broadcast %98 : vector<1x256xf32> to vector<16x256xf32>
    %100 = arith.mulf %97, %99 : vector<16x256xf32>
    %c239_i32_28 = arith.constant 239 : i32
    %101 = tpu.dynamic_rotate %67 by %c239_i32_28 dim 1 : vector<16x256xf32>, i32 -> vector<16x256xf32>
    %102 = vector.extract_strided_slice %2 {offsets = [8, 0], sizes = [1, 256], strides = [1, 1]} : vector<9x256xf32> to vector<1x256xf32>
    %103 = vector.broadcast %102 : vector<1x256xf32> to vector<16x256xf32>
    %104 = arith.mulf %101, %103 : vector<16x256xf32>
    %105 = tpu.concatenate %72, %76, %80, %84, %88, %92, %96, %100, %104 in 0 : vector<16x256xf32>, vector<16x256xf32>, vector<16x256xf32>, vector<16x256xf32>, vector<16x256xf32>, vector<16x256xf32>, vector<16x256xf32>, vector<16x256xf32>, vector<16x256xf32> -> vector<144x256xf32>
    %cst_29 = arith.constant dense<0.000000e+00> : vector<16x256xf32>
    %106 = tpu.matmul %68, %105, %cst_29 {dimension_numbers = #tpu.dot_dimension_numbers<[1], [0], [0], [1], [0, 0, 1, 1], [], []>} : vector<16x144xf32>, vector<144x256xf32>, vector<16x256xf32> -> vector<16x256xf32>
    %c0_30 = arith.constant 0 : index
    %c0_31 = arith.constant 0 : index
    %107 = vector.load %arg9[%c0_30, %c0_31] : memref<1x256xf32, #tpu.memory_space<vmem>>, vector<1x256xf32>
    %c0_32 = arith.constant 0 : index
    %c0_33 = arith.constant 0 : index
    %108 = vector.load %arg10[%c0_32, %c0_33] : memref<1x256xf32, #tpu.memory_space<vmem>>, vector<1x256xf32>
    %109 = arith.mulf %106, %106 : vector<16x256xf32>
    %110 = tpu.concatenate %106, %109 in 0 : vector<16x256xf32>, vector<16x256xf32> -> vector<32x256xf32>
    %cst_34 = arith.constant dense<0.000000e+00> : vector<32x16xf32>
    %111 = tpu.matmul %110, %3, %cst_34 {dimension_numbers = #tpu.dot_dimension_numbers<[1], [0], [0], [1], [0, 0, 1, 1], [], []>} : vector<32x256xf32>, vector<256x16xf32>, vector<32x16xf32> -> vector<32x16xf32>
    %112 = vector.extract_strided_slice %111 {offsets = [0, 0], sizes = [16, 16], strides = [1, 1]} : vector<32x16xf32> to vector<16x16xf32>
    %113 = vector.extract_strided_slice %111 {offsets = [16, 0], sizes = [16, 16], strides = [1, 1]} : vector<32x16xf32> to vector<16x16xf32>
    %114 = arith.mulf %112, %112 : vector<16x16xf32>
    %115 = arith.subf %113, %114 : vector<16x16xf32>
    %cst_35 = arith.constant 9.99999974E-6 : f32
    %116 = vector.broadcast %cst_35 : f32 to vector<16x16xf32>
    %117 = arith.addf %115, %116 : vector<16x16xf32>
    %118 = math.rsqrt %117 : vector<16x16xf32>
    %119 = tpu.concatenate %112, %118 in 0 : vector<16x16xf32>, vector<16x16xf32> -> vector<32x16xf32>
    %cst_36 = arith.constant dense<0.000000e+00> : vector<32x256xf32>
    %120 = tpu.matmul %119, %4, %cst_36 {dimension_numbers = #tpu.dot_dimension_numbers<[1], [0], [0], [1], [0, 0, 1, 1], [], []>} : vector<32x16xf32>, vector<16x256xf32>, vector<32x256xf32> -> vector<32x256xf32>
    %121 = vector.extract_strided_slice %120 {offsets = [0, 0], sizes = [16, 256], strides = [1, 1]} : vector<32x256xf32> to vector<16x256xf32>
    %122 = vector.extract_strided_slice %120 {offsets = [16, 0], sizes = [16, 256], strides = [1, 1]} : vector<32x256xf32> to vector<16x256xf32>
    %123 = arith.subf %106, %121 : vector<16x256xf32>
    %124 = arith.mulf %123, %122 : vector<16x256xf32>
    %125 = vector.broadcast %107 : vector<1x256xf32> to vector<16x256xf32>
    %126 = arith.mulf %124, %125 : vector<16x256xf32>
    %127 = vector.broadcast %108 : vector<1x256xf32> to vector<16x256xf32>
    %128 = arith.addf %126, %127 : vector<16x256xf32>
    %cst_37 = arith.constant 0.000000e+00 : f32
    %129 = vector.broadcast %cst_37 : f32 to vector<16x256xf32>
    %130 = arith.maximumf %128, %129 : vector<16x256xf32>
    %131 = arith.addf %130, %1 : vector<16x256xf32>
    %c0_38 = arith.constant 0 : index
    %c0_39 = arith.constant 0 : index
    %c0_40 = arith.constant 0 : index
    %132 = vector.load %arg11[%c0_38, %c0_39, %c0_40] : memref<1x16x256xf32, #tpu.memory_space<vmem>>, vector<1x16x256xf32>
    %133 = vector.shape_cast %132 : vector<1x16x256xf32> to vector<16x256xf32>
    %134 = vector.shape_cast %131 : vector<16x256xf32> to vector<1x16x256xf32>
    tpu.vector_store %arg11[%c0_38, %c0_39, %c0_40], %134 {strides = array<i32>} : memref<1x16x256xf32, #tpu.memory_space<vmem>>, vector<1x16x256xf32>,
    return
  }
  func.func @transform_0(%arg0: i32) -> (i32, i32, i32) {
    %c0_i32 = arith.constant 0 : i32
    %c0_i32_0 = arith.constant 0 : i32
    %c0_i32_1 = arith.constant 0 : i32
    return %arg0, %c0_i32, %c0_i32_0 : i32, i32, i32
  }
  func.func @transform_1(%arg0: i32) -> (i32, i32) {
    %c0_i32 = arith.constant 0 : i32
    %c0_i32_0 = arith.constant 0 : i32
    %c0_i32_1 = arith.constant 0 : i32
    return %c0_i32, %c0_i32_0 : i32, i32
  }
  func.func @transform_2(%arg0: i32) -> (i32, i32) {
    %c0_i32 = arith.constant 0 : i32
    %c0_i32_0 = arith.constant 0 : i32
    %c0_i32_1 = arith.constant 0 : i32
    return %c0_i32, %c0_i32_0 : i32, i32
  }
  func.func @transform_3(%arg0: i32) -> (i32, i32) {
    %c0_i32 = arith.constant 0 : i32
    %c0_i32_0 = arith.constant 0 : i32
    %c0_i32_1 = arith.constant 0 : i32
    return %c0_i32, %c0_i32_0 : i32, i32
  }
  func.func @transform_4(%arg0: i32) -> (i32, i32) {
    %c0_i32 = arith.constant 0 : i32
    %c0_i32_0 = arith.constant 0 : i32
    %c0_i32_1 = arith.constant 0 : i32
    return %c0_i32, %c0_i32_0 : i32, i32
  }
  func.func @transform_5(%arg0: i32) -> (i32, i32) {
    %c0_i32 = arith.constant 0 : i32
    %c0_i32_0 = arith.constant 0 : i32
    %c0_i32_1 = arith.constant 0 : i32
    return %c0_i32, %c0_i32_0 : i32, i32
  }
  func.func @transform_6(%arg0: i32) -> (i32, i32) {
    %c0_i32 = arith.constant 0 : i32
    %c0_i32_0 = arith.constant 0 : i32
    %c0_i32_1 = arith.constant 0 : i32
    return %c0_i32, %c0_i32_0 : i32, i32
  }
  func.func @transform_7(%arg0: i32) -> (i32, i32) {
    %c0_i32 = arith.constant 0 : i32
    %c0_i32_0 = arith.constant 0 : i32
    %c0_i32_1 = arith.constant 0 : i32
    return %c0_i32, %c0_i32_0 : i32, i32
  }
  func.func @transform_8(%arg0: i32) -> (i32, i32) {
    %c0_i32 = arith.constant 0 : i32
    %c0_i32_0 = arith.constant 0 : i32
    %c0_i32_1 = arith.constant 0 : i32
    return %c0_i32, %c0_i32_0 : i32, i32
  }
  func.func @transform_9(%arg0: i32) -> (i32, i32) {
    %c0_i32 = arith.constant 0 : i32
    %c0_i32_0 = arith.constant 0 : i32
    %c0_i32_1 = arith.constant 0 : i32
    return %c0_i32, %c0_i32_0 : i32, i32
  }
  func.func @transform_10(%arg0: i32) -> (i32, i32, i32) {
    %c0_i32 = arith.constant 0 : i32
    %c0_i32_0 = arith.constant 0 : i32
    %c0_i32_1 = arith.constant 0 : i32
    return %arg0, %c0_i32, %c0_i32_0 : i32, i32, i32
  }
}

</mosaic_0001>

<bundles_post_ra>
// kernel: tile.23
= control target key start
LH: loop header
LB: loop body
LE: loop exit
PB: predicated region body
PF: predicated region fallthrough
CT: control target
= control target key end

     0   :  { %s28_s0 = inlined_call_operand.vmem [shape: f32[16], index: 0, kind: input, shape index: {}]   ;;  %s29_s1 = inlined_call_operand.vmem [shape: f32[16,16], index: 1, kind: output, shape index: {}]  }
   0x1   :  { %v4_v0 = vld [vmem:[%s28_s0] ss:$0 sm:$0xff] }
   0x2   :  { %5 = vst [vmem:[%s29_s1] sm:$0xff] %v4_v0  ;;  %8 = vst [vmem:[%s29_s1 + $0x8] sm:$0xff] %v4_v0 }

// kernel: tile.24
= control target key start
LH: loop header
LB: loop body
LE: loop exit
PB: predicated region body
PF: predicated region fallthrough
CT: control target
= control target key end

     0   :  { %s7_s6 = smov 3  ;;  %s21_s9 = smov 3  ;;  %vm4_vm0 = vcmask 130048   ;;  %vm11_vm1 = vcmask 1048448   ;;  %vm18_vm2 = vcmask 917248   ;;  %vm25_vm3 = vcmask 786048   ;;  %s128_s0 = inlined_call_operand.vmem [shape: f32[16,16], index: 0, kind: input, shape index: {}]   ;;  %s129_s1 = inlined_call_operand.vmem [shape: f32[1,256], index: 1, kind: output, shape index: {}]  }
   0x1   :  { %v66_v0 = vld [vmem:[%s128_s0 + $0x7] ss:$8 sm:%s7_s6]   ;;  %s81_s10 = smov 112   ;;  %v68_v1 = vld [vmem:[%s128_s0 + $0x5] ss:$8 sm:%s21_s9]   ;;  %s14_s13 = smov 3 }
   0x2   :  { %9 = vrot.lane.b32.xlu0 %v66_v0, %s81_s10  ;;  %s82_s14 = smov 80   ;;  %v67_v2 = vld [vmem:[%s128_s0 + $0x6] ss:$8 sm:%s14_s13]   ;;  %s28_s17 = smov 3  ;;  %vm32_vm4 = vcmask 654848   ;;  %vm39_vm5 = vcmask 523648  }
   0x3   :  { %23 = vrot.lane.b32.xlu1 %v68_v1, %s82_s14  ;;  %v69_v3 = vld [vmem:[%s128_s0 + $0x4] ss:$8 sm:%s28_s17]   ;;  %s35_s20 = smov 3  ;;  %s42_s21 = smov 3  ;;  %vm46_vm6 = vcmask 392448   ;;  %vm53_vm7 = vcmask 261248  }
   0x4   :  { %s83_s22 = smov 96   ;;  %s84_s23 = smov 64   ;;  %v70_v4 = vld [vmem:[%s128_s0 + $0x3] ss:$8 sm:%s35_s20]   ;;  %v71_v5 = vld [vmem:[%s128_s0 + $0x2] ss:$8 sm:%s42_s21]  }
   0x5   :  { %s2_s26 = smov 3  ;;  %s49_s29 = smov 3 }
   0x6   :  { %16 = vrot.lane.b32.xlu0 %v67_v2, %s83_s22  ;;  %v3_v6 = vld [vmem:[%s128_s0] ss:$8 sm:%s2_s26]   ;;  %s85_s3 = smov 48   ;;  %s86_s4 = smov 32  }
   0x7   :  { %30 = vrot.lane.b32.xlu1 %v69_v3, %s84_s23  ;;  %5 = vst.msk [vmem:[#allocation0] ss:$8 sm:$0x3] %vm4_vm0, %v3_v6   ;;  %v72_v7 = vld [vmem:[%s128_s0 + $0x1] ss:$8 sm:%s49_s29]   ;;  %s87_s0 = smov 16  }
   0xa   :  { %37 = vrot.lane.b32.xlu0 %v70_v4, %s85_s3 }
   0xb   :  { %44 = vrot.lane.b32.xlu1 %v71_v5, %s86_s4 }
   0xe   :  { %51 = vrot.lane.b32.xlu0 %v72_v7, %s87_s0 }
  0x74   :  { %v10_v8 = vpop.permute.xlu0 %9  }
  0x75   :  { %12 = vst.msk [vmem:[#allocation0] ss:$8 sm:$0x3] %vm11_vm1, %v10_v8   ;;  %v24_v9 = vpop.permute.xlu1 %23  }
  0x78   :  { %v17_v10 = vpop.permute.xlu0 %16  }
  0x79   :  { %19 = vst.msk [vmem:[#allocation0] ss:$8 sm:$0x3] %vm18_vm2, %v17_v10   ;;  %v31_v11 = vpop.permute.xlu1 %30  }
  0x7a   :  { %26 = vst.msk [vmem:[#allocation0] ss:$8 sm:$0x3] %vm25_vm3, %v24_v9  }
  0x7b   :  { %33 = vst.msk [vmem:[#allocation0] ss:$8 sm:$0x3] %vm32_vm4, %v31_v11  }
  0x7c   :  { %v38_v12 = vpop.permute.xlu0 %37  }
  0x7d   :  { %40 = vst.msk [vmem:[#allocation0] ss:$8 sm:$0x3] %vm39_vm5, %v38_v12   ;;  %v45_v13 = vpop.permute.xlu1 %44  }
  0x7e   :  { %47 = vst.msk [vmem:[#allocation0] ss:$8 sm:$0x3] %vm46_vm6, %v45_v13  }
  0x80   :  { %v52_v14 = vpop.permute.xlu0 %51  }
  0x81   :  { %54 = vst.msk [vmem:[#allocation0] ss:$8 sm:$0x3] %vm53_vm7, %v52_v14  }
  0x88   :  { %v58_v15 = vld [vmem:[#allocation0] sm:$0x1]  ;;  %v62_v16 = vld [vmem:[#allocation0 + $0x8] sm:$0x1] }
  0x89   :  { %60 = vst [vmem:[%s129_s1] sm:$0x1] %v58_v15  ;;  %73 = vst [vmem:[%s129_s1 + $0x1] sm:$0x1] %v62_v16 }

// kernel: transformer_block.1
= control target key start
LH: loop header
LB: loop body
LE: loop exit
PB: predicated region body
PF: predicated region fallthrough
CT: control target
= control target key end

     0   :  { %s1832_s13 = smov 0   ;;  %s2592_s0 = inlined_call_operand.vmem [shape: f32[2,16,256], index: 0, kind: input, shape index: {}]   ;;  %s2593_s1 = inlined_call_operand.vmem [shape: f32[16,144], index: 1, kind: input, shape index: {}]   ;;  %s2594_s2 = inlined_call_operand.vmem [shape: f32[16,144], index: 2, kind: input, shape index: {}]   ;;  %s2595_s3 = inlined_call_operand.vmem [shape: f32[9,256], index: 3, kind: input, shape index: {}]   ;;  %s2596_s4 = inlined_call_operand.vmem [shape: f32[256,16], index: 4, kind: input, shape index: {}]   ;;  %s2597_s5 = inlined_call_operand.vmem [shape: f32[16,256], index: 5, kind: input, shape index: {}]   ;;  %s2598_s6 = inlined_call_operand.vmem [shape: f32[1,256], index: 6, kind: input, shape index: {}]   ;;  %s2599_s7 = inlined_call_operand.vmem [shape: f32[1,256], index: 7, kind: input, shape index: {}]   ;;  %s2600_s8 = inlined_call_operand.vmem [shape: f32[1,256], index: 8, kind: input, shape index: {}]   ;;  %s2601_s9 = inlined_call_operand.vmem [shape: f32[1,256], index: 9, kind: input, shape index: {}]   ;;  %s2602_s10 = inlined_call_operand.vmem [shape: f32[2,16,256], index: 10, kind: output, shape index: {}]  }
   0x1 LB: > { %s1472_s14 = sadd.s32 4294967295, %s1766_s13   ;;  %p1476_p0 = scmp.ge.s32.totalorder %s1766_s13, 1  ;;  %s1766_s13 = sphi %s1832_s13, %s20_s13  }
   0x2   : > { %p312_p1 = scmp.lt.s32.totalorder %s1766_s13, 3 }
   0x4   : > { %p313_p2 = pnand %p1476_p0, %p312_p1 }
   0x5   : > { %p350_p3 = scmp.lt.s32.totalorder (!%p313_p2), %s1472_s14, 1  ;;  %s1768_s19 = smov (!%p313_p2), 17   ;;  %v405_v4 = vld [vmem:[%s2593_s1 + $0x8] sm:$0xff] (!%p313_p2)  ;;  %vm622_vm0 = vcmask (!%p313_p2), 130048   ;;  %v384_v5 = vld [vmem:[%s2596_s4 + $0x80] sm:$0xff] (!%p313_p2)  ;;  %v386_v10 = vld [vmem:[%s2596_s4 + $0x90] sm:$0xff] (!%p313_p2)  ;;  %v416_v50 = vlaneseq (!%p313_p2) }
   0x6   : > { %316 = sbr.rel (%p313_p2) target bundleno = 1741 (0x6cd), region = 60  ;;  %s1769_s20 = smov (!%p313_p2), 16   ;;  %1483 = vmatprep.mubr.msk.f32.mxu0 (!%p313_p2), %vm622_vm0, %v405_v4  ;;  %v385_v6 = vld [vmem:[%s2596_s4 + $0x88] sm:$0xff] (!%p313_p2)  ;;  %v368_v8 = vld [vmem:[%s2596_s4] sm:$0xff] (!%p313_p2)  ;;  %v387_v12 = vld [vmem:[%s2596_s4 + $0x98] sm:$0xff] (!%p313_p2) }
   0x7   : > { %s1770_s21 = smov (!%p313_p2), 15   ;;  %s1771_s22 = smov (!%p313_p2), 1   ;;  %v1936_v7 = vpack.c.bf16 (!%p313_p2), %v385_v6, %v384_v5  ;;  %v369_v9 = vld [vmem:[%s2596_s4 + $0x8] sm:$0xff] (!%p313_p2)  ;;  %v370_v13 = vld [vmem:[%s2596_s4 + $0x10] sm:$0xff] (!%p313_p2)  ;;  %v371_v14 = vld [vmem:[%s2596_s4 + $0x18] sm:$0xff] (!%p313_p2)  ;;  %v1959_v15 = vpack.c.bf16 (!%p313_p2), %v387_v12, %v386_v10  ;;  %v2065_v51 = vshrl.u32 (!%p313_p2), %v416_v50, 7 }
   0x8   : > { %s1772_s23 = smov (!%p313_p2), 127   ;;  %s1773_s24 = smov (!%p313_p2), 113   ;;  %v1947_v11 = vpack.c.bf16 (!%p313_p2), %v369_v9, %v368_v8  ;;  %v388_v16 = vld [vmem:[%s2596_s4 + $0xa0] sm:$0xff] (!%p313_p2)  ;;  %v389_v17 = vld [vmem:[%s2596_s4 + $0xa8] sm:$0xff] (!%p313_p2)  ;;  %v1968_v18 = vpack.c.bf16 (!%p313_p2), %v371_v14, %v370_v13  ;;  %v390_v22 = vld [vmem:[%s2596_s4 + $0xb0] sm:$0xff] (!%p313_p2)  ;;  %v2067_v52 = vand.u32 (!%p313_p2), 127, %v416_v50 }
   0x9   : > { %s1774_s25 = smov (!%p313_p2), 112   ;;  %s2604_s28 = smov (!%p313_p2), 111   ;;  %1624 = vmatprep.subr.bf16.mxu1 (!%p313_p2), %v1936_v7  ;;  %v1971_v19 = vpack.c.bf16 (!%p313_p2), %v389_v17, %v388_v16  ;;  %v372_v20 = vld [vmem:[%s2596_s4 + $0x20] sm:$0xff] (!%p313_p2)  ;;  %v373_v21 = vld [vmem:[%s2596_s4 + $0x28] sm:$0xff] (!%p313_p2)  ;;  %v391_v23 = vld [vmem:[%s2596_s4 + $0xb8] sm:$0xff] (!%p313_p2)  ;;  %v2070_v53 = vsub.s32 (!%p313_p2), 0, %v2065_v51 }
   0xa   : > { %1626 = vmatpush3.bf16.msra.mxu1 (!%p313_p2), %v1947_v11  ;;  %v1986_v24 = vpack.c.bf16 (!%p313_p2), %v373_v21, %v372_v20  ;;  %v1989_v25 = vpack.c.bf16 (!%p313_p2), %v391_v23, %v390_v22  ;;  %v374_v26 = vld [vmem:[%s2596_s4 + $0x30] sm:$0xff] (!%p313_p2)  ;;  %v375_v27 = vld [vmem:[%s2596_s4 + $0x38] sm:$0xff] (!%p313_p2)  ;;  %v392_v28 = vld [vmem:[%s2596_s4 + $0xc0] sm:$0xff] (!%p313_p2)  ;;  %vm418_vm1 = vcmp.lt.s32.totalorder (!%p313_p2), %v2067_v52, 17  ;;  %v2100_v6 = vsub.s32 (!%p313_p2), 1, %v2065_v51  ;;  %s2606_s29 = smov (!%p313_p2), 111  }
   0xb   : > { %1628 = vmatprep.subr.bf16.mxu1 (!%p313_p2), %v1959_v15  ;;  %v393_v29 = vld [vmem:[%s2596_s4 + $0xc8] sm:$0xff] (!%p313_p2)  ;;  %v2004_v30 = vpack.c.bf16 (!%p313_p2), %v375_v27, %v374_v26  ;;  %v376_v32 = vld [vmem:[%s2596_s4 + $0x40] sm:$0xff] (!%p313_p2)  ;;  %v394_v34 = vld [vmem:[%s2596_s4 + $0xd0] sm:$0xff] (!%p313_p2)  ;;  %vm443_vm2 = vcmp.lt.s32.totalorder (!%p313_p2), %v2067_v52, 16  ;;  %v475_v26 = vsub.s32 (!%p313_p2), 2, %v2065_v51  ;;  %vm468_vm3 = vcmp.lt.s32.totalorder (!%p313_p2), %v2067_v52, 15 }
   0xc   : > { %v2007_v31 = vpack.c.bf16 (!%p313_p2), %v393_v29, %v392_v28  ;;  %v377_v33 = vld [vmem:[%s2596_s4 + $0x48] sm:$0xff] (!%p313_p2)  ;;  %v395_v35 = vld [vmem:[%s2596_s4 + $0xd8] sm:$0xff] (!%p313_p2)  ;;  %v378_v38 = vld [vmem:[%s2596_s4 + $0x50] sm:$0xff] (!%p313_p2)  ;;  %vm493_vm4 = vcmp.lt.s32.totalorder (!%p313_p2), %v2067_v52, 1  ;;  %vm530_vm5 = vcmp.lt.s32.totalorder (!%p313_p2), %v2067_v52, 127  ;;  %vm555_vm6 = vcmp.lt.s32.totalorder (!%p313_p2), %v2067_v52, 113 }
   0xd   : > { %s2609_s14 = smov (!%p350_p3, %s1472_s14), 1  ;;  %v2022_v36 = vpack.c.bf16 %v377_v33, %v376_v32  ;;  %v2025_v37 = vpack.c.bf16 %v395_v35, %v394_v34  ;;  %v379_v39 = vld [vmem:[%s2596_s4 + $0x58] sm:$0xff]  ;;  %v396_v40 = vld [vmem:[%s2596_s4 + $0xe0] sm:$0xff]  ;;  %v397_v41 = vld [vmem:[%s2596_s4 + $0xe8] sm:$0xff]  ;;  %vm580_vm7 = vcmp.lt.s32.totalorder %v2067_v52, 112  ;;  %vm605_vm8 = vcmp.lt.s32.totalorder %v2067_v52, 111 }
   0xe   : > { %s2603_s15 = sshll.u32 %s2609_s14, 5  ;;  %1630 = vmatpush3.bf16.msra.mxu1 %v1968_v18  ;;  %v2040_v42 = vpack.c.bf16 %v379_v39, %v378_v38  ;;  %v2043_v43 = vpack.c.bf16 %v397_v41, %v396_v40  ;;  %v380_v44 = vld [vmem:[%s2596_s4 + $0x60] sm:$0xff]  ;;  %v381_v45 = vld [vmem:[%s2596_s4 + $0x68] sm:$0xff]  ;;  %v398_v46 = vld [vmem:[%s2596_s4 + $0xf0] sm:$0xff] }
   0xf   : > { %s1848_s18 = scalar_lea.vmem %s2592_s0, %s2603_s15  ;;  %1632 = vmatprep.subr.bf16.mxu1 %v1971_v19  ;;  %v399_v47 = vld [vmem:[%s2596_s4 + $0xf8] sm:$0xff]  ;;  %v2058_v48 = vpack.c.bf16 %v381_v45, %v380_v44  ;;  %v2075_v54 = vld [vmem:[%s2595_s3] sm:$0xff]  ;;  %v2080_v55 = vld [vmem:[%s2595_s3 + $0x8] sm:$0xff]  ;;  %s2607_s15 = sshll.u32 %s2609_s14, 5 }
  0x10   : > { %v1851_v0 = vld [vmem:[%s1848_s18 + $0x8] sm:$0xff]  ;;  %v1854_v1 = vld [vmem:[%s1848_s18] sm:$0xff]  ;;  %v1861_v2 = vld [vmem:[%s1848_s18 + $0x18] sm:$0xff]  ;;  %v2061_v49 = vpack.c.bf16 %v399_v47, %v398_v46  ;;  %v2085_v58 = vrot.slane %v2075_v54, %v2070_v53  ;;  %v2089_v59 = vrot.slane %v2080_v55, %v2070_v53  ;;  %v2109_v20 = vrot.slane %v2075_v54, %v2100_v6  ;;  %s359_s27 = scalar_lea.vmem %s2602_s10, %s2607_s15 }
  0x11   : > { %412 = vrot.lane.b32.xlu1 %v1851_v0, %s1768_s19  ;;  %408 = vrot.lane.b32.xlu0 %v1854_v1, %s1768_s19  ;;  %v1864_v3 = vld [vmem:[%s1848_s18 + $0x10] sm:$0xff]  ;;  %v2113_v21 = vrot.slane %v2080_v55, %v2100_v6  ;;  %v2130_v45 = vrot.slane %v2075_v54, %v475_v26  ;;  %v2133_v46 = vrot.slane %v2080_v55, %v475_v26  ;;  %v951_v52 = vld [vmem:[%s2594_s2 + $0x18] sm:$0xff] }
  0x12   : > { %1634 = vmatpush3.bf16.msra.mxu1 %v1986_v24 }
  0x13   : > { %1636 = vmatprep.subr.bf16.mxu1 %v1989_v25 }
  0x15   : > { %414 = vrot.lane.b32.xlu1 %v1861_v2, %s1768_s19  ;;  %410 = vrot.lane.b32.xlu0 %v1864_v3, %s1768_s19 }
  0x16   : > { %1638 = vmatpush3.bf16.msra.mxu1 %v2004_v30 }
  0x17   : > { %1640 = vmatprep.subr.bf16.mxu1 %v2007_v31 }
  0x19   : > { %437 = vrot.lane.b32.xlu1 %v1864_v3, %s1769_s20  ;;  %435 = vrot.lane.b32.xlu0 %v1854_v1, %s1769_s20 }
  0x1a   : > { %1642 = vmatpush3.bf16.msra.mxu1 %v2022_v36 }
  0x1b   : > { %1644 = vmatprep.subr.bf16.mxu1 %v2025_v37 }
  0x1d   : > { %441 = vrot.lane.b32.xlu1 %v1861_v2, %s1769_s20  ;;  %439 = vrot.lane.b32.xlu0 %v1851_v0, %s1769_s20 }
  0x1e   : > { %1646 = vmatpush3.bf16.msra.mxu1 %v2040_v42 }
  0x1f   : > { %1648 = vmatprep.subr.bf16.mxu1 %v2043_v43 }
  0x21   : > { %462 = vrot.lane.b32.xlu1 %v1864_v3, %s1770_s21  ;;  %460 = vrot.lane.b32.xlu0 %v1854_v1, %s1770_s21 }
  0x22   : > { %1650 = vmatpush3.bf16.msra.mxu1 %v2058_v48 }
  0x23   : > { %1652 = vmatprep.subr.bf16.mxu1 %v2061_v49 }
  0x25   : > { %466 = vrot.lane.b32.xlu1 %v1861_v2, %s1770_s21  ;;  %464 = vrot.lane.b32.xlu0 %v1851_v0, %s1770_s21 }
  0x29   : > { %487 = vrot.lane.b32.xlu1 %v1864_v3, %s1771_s22  ;;  %485 = vrot.lane.b32.xlu0 %v1854_v1, %s1771_s22 }
  0x2d   : > { %491 = vrot.lane.b32.xlu1 %v1861_v2, %s1771_s22  ;;  %489 = vrot.lane.b32.xlu0 %v1851_v0, %s1771_s22 }
  0x31   : > { %524 = vrot.lane.b32.xlu1 %v1864_v3, %s1772_s23  ;;  %522 = vrot.lane.b32.xlu0 %v1854_v1, %s1772_s23 }
  0x35   : > { %528 = vrot.lane.b32.xlu1 %v1861_v2, %s1772_s23  ;;  %526 = vrot.lane.b32.xlu0 %v1851_v0, %s1772_s23 }
  0x39   : > { %549 = vrot.lane.b32.xlu1 %v1864_v3, %s1773_s24  ;;  %547 = vrot.lane.b32.xlu0 %v1854_v1, %s1773_s24 }
  0x3d   : > { %553 = vrot.lane.b32.xlu1 %v1861_v2, %s1773_s24  ;;  %551 = vrot.lane.b32.xlu0 %v1851_v0, %s1773_s24 }
  0x41   : > { %574 = vrot.lane.b32.xlu1 %v1864_v3, %s1774_s25  ;;  %572 = vrot.lane.b32.xlu0 %v1854_v1, %s1774_s25 }
  0x45   : > { %578 = vrot.lane.b32.xlu1 %v1861_v2, %s1774_s25  ;;  %576 = vrot.lane.b32.xlu0 %v1851_v0, %s1774_s25 }
  0x49   : > { %599 = vrot.lane.b32.xlu1 %v1864_v3, %s2604_s28  ;;  %597 = vrot.lane.b32.xlu0 %v1854_v1, %s2604_s28 }
  0x4d   : > { %603 = vrot.lane.b32.xlu1 %v1861_v2, %s2604_s28  ;;  %601 = vrot.lane.b32.xlu0 %v1851_v0, %s2604_s28 }
  0x83   : > { %v413_v56 = vpop.permute.xlu1 %412  ;;  %v409_v57 = vpop.permute.xlu0 %408 }
  0x84   : > { %v419_v60 = vsel %vm418_vm1, %v409_v57, %v413_v56  ;;  %v421_v61 = vsel %vm418_vm1, %v413_v56, %v409_v57  ;;  %v500_v56 = vsub.s32 3, %v2065_v51  ;;  %v512_v57 = vsub.s32 4, %v2065_v51 }
  0x85   : > { %v431_v8 = vmul.f32 %v2085_v58, %v421_v61  ;;  %v432_v10 = vmul.f32 %v2089_v59, %v419_v60 }
  0x87   : > { %v415_v62 = vpop.permute.xlu1 %414  ;;  %v411_v63 = vpop.permute.xlu0 %410 }
  0x88   : > { %v420_v4 = vsel %vm418_vm1, %v411_v63, %v415_v62  ;;  %v422_v5 = vsel %vm418_vm1, %v415_v62, %v411_v63 }
  0x89   : > { %v433_v9 = vmul.f32 %v2085_v58, %v422_v5  ;;  %v434_v12 = vmul.f32 %v2089_v59, %v420_v4 }
  0x8b   : > { %v438_v13 = vpop.permute.xlu1 %437  ;;  %v436_v14 = vpop.permute.xlu0 %435  ;;  %v1587_v16 = vpack.c.bf16 %v434_v12, %v432_v10  ;;  %v1589_v17 = vpack.c.bf16 %v433_v9, %v431_v8 }
  0x8d   : > { %1588 = vmatprep.subr.bf16.mxu0 %v1587_v16  ;;  %v2150_v16 = vrot.slane %v2080_v55, %v512_v57 }
  0x8e   : > { %1590 = vmatpush1.bf16.msra.mxu0 %v1589_v17  ;;  %v2154_v17 = vrot.slane %v2075_v54, %v500_v56 }
  0x8f   : > { %v442_v22 = vpop.permute.xlu1 %441  ;;  %v440_v23 = vpop.permute.xlu0 %439 }
  0x90   : > { %v445_v27 = vsel %vm443_vm2, %v438_v13, %v442_v22  ;;  %v447_v28 = vsel %vm443_vm2, %v442_v22, %v438_v13  ;;  %v444_v29 = vsel %vm443_vm2, %v436_v14, %v440_v23  ;;  %v446_v32 = vsel %vm443_vm2, %v440_v23, %v436_v14 }
  0x91   : > { %v458_v33 = vmul.f32 %v2109_v20, %v447_v28  ;;  %v459_v34 = vmul.f32 %v2113_v21, %v445_v27  ;;  %v456_v35 = vmul.f32 %v2109_v20, %v446_v32  ;;  %v457_v38 = vmul.f32 %v2113_v21, %v444_v29 }
  0x92   : > { %v2157_v22 = vrot.slane %v2080_v55, %v500_v56  ;;  %v2160_v23 = vrot.slane %v2075_v54, %v512_v57  ;;  %v537_v28 = vsub.s32 5, %v2065_v51  ;;  %v519_v29 = vmul.f32 %v2150_v16, %v1851_v0 }
  0x93   : > { %v463_v39 = vpop.permute.xlu1 %462  ;;  %v461_v40 = vpop.permute.xlu0 %460  ;;  %v1591_v41 = vpack.c.bf16 %v459_v34, %v457_v38  ;;  %v1593_v44 = vpack.c.bf16 %v458_v33, %v456_v35  ;;  %v521_v32 = vmul.f32 %v2150_v16, %v1861_v2 }
  0x95   : > { %1592 = vmatprep.subr.bf16.mxu0 %v1591_v41  ;;  %v518_v41 = vmul.f32 %v2160_v23, %v1854_v1 }
  0x96   : > { %1594 = vmatpush1.bf16.msra.mxu0 %v1593_v44  ;;  %v520_v44 = vmul.f32 %v2160_v23, %v1864_v3  ;;  %v562_v3 = vsub.s32 6, %v2065_v51 }
  0x97   : > { %v467_v47 = vpop.permute.xlu1 %466  ;;  %v465_v50 = vpop.permute.xlu0 %464 }
  0x98   : > { %v470_v60 = vsel %vm468_vm3, %v463_v39, %v467_v47  ;;  %v472_v61 = vsel %vm468_vm3, %v467_v47, %v463_v39  ;;  %v469_v62 = vsel %vm468_vm3, %v461_v40, %v465_v50  ;;  %v471_v63 = vsel %vm468_vm3, %v465_v50, %v461_v40 }
  0x99   : > { %v483_v4 = vmul.f32 %v2130_v45, %v472_v61  ;;  %v484_v5 = vmul.f32 %v2133_v46, %v470_v60  ;;  %v481_v8 = vmul.f32 %v2130_v45, %v471_v63  ;;  %v482_v9 = vmul.f32 %v2133_v46, %v469_v62 }
  0x9a   : > { %v1603_v60 = vpack.c.bf16 %v521_v32, %v519_v29  ;;  %v2185_v61 = vrot.slane %v2075_v54, %v537_v28  ;;  %v2188_v62 = vrot.slane %v2080_v55, %v537_v28  ;;  %v1605_v63 = vpack.c.bf16 %v520_v44, %v518_v41 }
  0x9b   : > { %v488_v10 = vpop.permute.xlu1 %487  ;;  %v486_v12 = vpop.permute.xlu0 %485  ;;  %v1595_v13 = vpack.c.bf16 %v484_v5, %v482_v9  ;;  %v1597_v14 = vpack.c.bf16 %v483_v4, %v481_v8 }
  0x9d   : > { %1596 = vmatprep.subr.bf16.mxu0 %v1595_v13 }
  0x9e   : > { %1598 = vmatpush1.bf16.msra.mxu0 %v1597_v14 }
  0x9f   : > { %v492_v26 = vpop.permute.xlu1 %491  ;;  %v490_v27 = vpop.permute.xlu0 %489 }
  0xa0   : > { %v495_v33 = vsel %vm493_vm4, %v488_v10, %v492_v26  ;;  %v497_v34 = vsel %vm493_vm4, %v492_v26, %v488_v10  ;;  %v494_v35 = vsel %vm493_vm4, %v486_v12, %v490_v27  ;;  %v496_v38 = vsel %vm493_vm4, %v490_v27, %v486_v12 }
  0xa1   : > { %v508_v39 = vmul.f32 %v2154_v17, %v497_v34  ;;  %v509_v40 = vmul.f32 %v2157_v22, %v495_v33  ;;  %v506_v0 = vmul.f32 %v2154_v17, %v496_v38  ;;  %v507_v2 = vmul.f32 %v2157_v22, %v494_v35 }
  0xa2   : > { %v2205_v33 = vrot.slane %v2075_v54, %v562_v3  ;;  %v2208_v34 = vrot.slane %v2080_v55, %v562_v3 }
  0xa3   : > { %v525_v47 = vpop.permute.xlu1 %524  ;;  %v523_v50 = vpop.permute.xlu0 %522  ;;  %v1599_v56 = vpack.c.bf16 %v509_v40, %v507_v2  ;;  %v1601_v57 = vpack.c.bf16 %v508_v39, %v506_v0  ;;  %v587_v39 = vsub.s32 7, %v2065_v51 }
  0xa5   : > { %1600 = vmatprep.subr.bf16.mxu0 %v1599_v56 }
  0xa6   : > { %1602 = vmatpush1.bf16.msra.mxu0 %v1601_v57 }
  0xa7   : > { %v529_v1 = vpop.permute.xlu1 %528  ;;  %v527_v4 = vpop.permute.xlu0 %526  ;;  %1604 = vmatprep.subr.bf16.mxu0 %v1603_v60 }
  0xa8   : > { %v532_v5 = vsel %vm530_vm5, %v525_v47, %v529_v1  ;;  %v534_v8 = vsel %vm530_vm5, %v529_v1, %v525_v47  ;;  %v531_v9 = vsel %vm530_vm5, %v523_v50, %v527_v4  ;;  %v533_v10 = vsel %vm530_vm5, %v527_v4, %v523_v50 }
  0xa9   : > { %v545_v12 = vmul.f32 %v2185_v61, %v532_v5  ;;  %v546_v13 = vmul.f32 %v2188_v62, %v534_v8  ;;  %v543_v14 = vmul.f32 %v2185_v61, %v531_v9  ;;  %v544_v26 = vmul.f32 %v2188_v62, %v533_v10 }
  0xaa   : > { %1606 = vmatpush1.bf16.msra.mxu0 %v1605_v63  ;;  %v2225_v1 = vrot.slane %v2075_v54, %v587_v39  ;;  %v2228_v4 = vrot.slane %v2080_v55, %v587_v39 }
  0xab   : > { %v550_v27 = vpop.permute.xlu1 %549  ;;  %v548_v28 = vpop.permute.xlu0 %547  ;;  %v1607_v29 = vpack.c.bf16 %v546_v13, %v544_v26  ;;  %v1609_v32 = vpack.c.bf16 %v545_v12, %v543_v14 }
  0xad   : > { %1608 = vmatprep.subr.bf16.mxu0 %v1607_v29 }
  0xae   : > { %1610 = vmatpush1.bf16.msra.mxu0 %v1609_v32  ;;  %v2246_v32 = vld [vmem:[%s2595_s3 + $0x10] ss:$0 sm:$0xff] }
  0xaf   : > { %v554_v35 = vpop.permute.xlu1 %553  ;;  %v552_v38 = vpop.permute.xlu0 %551 }
  0xb0   : > { %v557_v40 = vsel %vm555_vm6, %v550_v27, %v554_v35  ;;  %v559_v0 = vsel %vm555_vm6, %v554_v35, %v550_v27  ;;  %v556_v2 = vsel %vm555_vm6, %v548_v28, %v552_v38  ;;  %v558_v41 = vsel %vm555_vm6, %v552_v38, %v548_v28  ;;  %v2251_v35 = vld [vmem:[%s2595_s3 + $0x18] ss:$0 sm:$0xff] }
  0xb1   : > { %v570_v44 = vmul.f32 %v2205_v33, %v557_v40  ;;  %v571_v47 = vmul.f32 %v2208_v34, %v559_v0  ;;  %v568_v50 = vmul.f32 %v2205_v33, %v556_v2  ;;  %v569_v51 = vmul.f32 %v2208_v34, %v558_v41 }
  0xb3   : > { %v575_v56 = vpop.permute.xlu1 %574  ;;  %v573_v57 = vpop.permute.xlu0 %572  ;;  %v1611_v60 = vpack.c.bf16 %v571_v47, %v569_v51  ;;  %v1613_v63 = vpack.c.bf16 %v570_v44, %v568_v50 }
  0xb5   : > { %1612 = vmatprep.subr.bf16.mxu0 %v1611_v60  ;;  %v404_v60 = vld [vmem:[%s2593_s1] sm:$0xff] }
  0xb6   : > { %1614 = vmatpush1.bf16.msra.mxu0 %v1613_v63  ;;  %v407_v63 = vld [vmem:[%s2593_s1 + $0x18] sm:$0xff] }
  0xb7   : > { %v579_v3 = vpop.permute.xlu1 %578  ;;  %v577_v5 = vpop.permute.xlu0 %576 }
  0xb8   : > { %v582_v8 = vsel %vm580_vm7, %v575_v56, %v579_v3  ;;  %v584_v9 = vsel %vm580_vm7, %v579_v3, %v575_v56  ;;  %v581_v10 = vsel %vm580_vm7, %v573_v57, %v577_v5  ;;  %v583_v12 = vsel %vm580_vm7, %v577_v5, %v573_v57  ;;  %v406_v3 = vld [vmem:[%s2593_s1 + $0x10] sm:$0xff] }
  0xb9   : > { %v595_v54 = vmul.f32 %v2225_v1, %v582_v8  ;;  %v596_v55 = vmul.f32 %v2228_v4, %v584_v9  ;;  %v593_v13 = vmul.f32 %v2225_v1, %v581_v10  ;;  %v594_v14 = vmul.f32 %v2228_v4, %v583_v12  ;;  %v382_v5 = vld [vmem:[%s2596_s4 + $0x70] sm:$0xff]  ;;  %v383_v8 = vld [vmem:[%s2596_s4 + $0x78] sm:$0xff] }
  0xba   : > { %v2281_v9 = vpack.c.bf16 %v383_v8, %v382_v5 }
  0xbb   : > { %v600_v26 = vpop.permute.xlu1 %599  ;;  %v598_v27 = vpop.permute.xlu0 %597  ;;  %v1615_v28 = vpack.c.bf16 %v596_v55, %v594_v14  ;;  %v1617_v29 = vpack.c.bf16 %v595_v54, %v593_v13 }
  0xbc   : > { %1654 = vmatpush3.bf16.msra.mxu1 %v2281_v9 }
  0xbd   : > { %1616 = vmatprep.subr.bf16.mxu0 %v1615_v28  ;;  %v401_v28 = vld [vmem:[%s2597_s5 + $0x8] sm:$0xff] }
  0xbe   : > { %1618 = vmatpush1.bf16.msra.mxu0 %v1617_v29  ;;  %v403_v29 = vld [vmem:[%s2597_s5 + $0x18] sm:$0xff] }
  0xbf   : > { %v604_v38 = vpop.permute.xlu1 %603  ;;  %v602_v39 = vpop.permute.xlu0 %601 }
  0xc0   : > { %v607_v40 = vsel %vm605_vm8, %v600_v26, %v604_v38  ;;  %v609_v0 = vsel %vm605_vm8, %v604_v38, %v600_v26  ;;  %v606_v2 = vsel %vm605_vm8, %v598_v27, %v602_v39  ;;  %v608_v41 = vsel %vm605_vm8, %v602_v39, %v598_v27  ;;  %v400_v39 = vld [vmem:[%s2597_s5] sm:$0xff] }
  0xc1   : > { %v620_v44 = vmul.f32 %v2246_v32, %v607_v40  ;;  %v621_v47 = vmul.f32 %v2251_v35, %v609_v0  ;;  %v618_v50 = vmul.f32 %v2246_v32, %v606_v2  ;;  %v619_v51 = vmul.f32 %v2251_v35, %v608_v41  ;;  %v402_v40 = vld [vmem:[%s2597_s5 + $0x10] sm:$0xff] }
  0xc2   : > { %v2310_v38 = vpack.c.bf16 %v403_v29, %v401_v28  ;;  %v2318_v0 = vpack.c.bf16 %v402_v40, %v400_v39  ;;  %v1776_v2 = vmov 0.0  }
  0xc3   : > { %v1619_v56 = vpack.c.bf16 %v621_v47, %v619_v51  ;;  %v1621_v57 = vpack.c.bf16 %v620_v44, %v618_v50 }
  0xc5   : > { %1620 = vmatprep.subr.bf16.mxu0 %v1619_v56 }
  0xc6   : > { %1622 = vmatpush1.bf16.msra.mxu0 %v1621_v57 }
  0xc7   : > { %1656 = vmatprep.subr.bf16.mxu0 %v2310_v38 }
  0xc9   : > { %694 = vmatmul.mubr.f32.vlgmr.msra.gmra.mrb[0].mxu0 %v404_v60 }
  0xca   : > { %1484 = vmatprep.mubr.msk.f32.mxu0 %vm622_vm0, %v407_v63  ;;  %1658 = vmatpush1.bf16.msra.mxu0 %v2318_v0 }
  0xcb   : > { %1696 = vmatprep.subr.bf16.mxu0 %v1936_v7 }
  0xcd   : > { %700 = vmatmul.mubr.f32.gmra.mrb[2].mxu0 %v406_v3 }
  0xce   : > { %881 = vmatprep.mubr.f32.mxu0 %v1776_v2 }
 0x19c   : > { %v2284_v10 = vpop.f32.mrb[0].mxu0 }
 0x19d   : > { %v2286_v12 = vpop.f32.mrb[1].mxu0  ;;  %v708_v14 = vmul.f32 %v2284_v10, %v2284_v10 }
 0x19e   : > { %776 = vmatprep.mubr.f32.mxu1 %v2286_v12  ;;  %v709_v13 = vmul.f32 %v2286_v12, %v2286_v12 }
 0x19f   : > { %777 = vmatmul.mubr.f32.vlgmr.msra.gmra.mrb[0].mxu1 %v2284_v10 }
 0x1a0   : > { %v2290_v54 = vpop.f32.mrb[2].mxu0 }
 0x1a1   : > { %v2292_v55 = vpop.f32.mrb[3].mxu0  ;;  %v710_v27 = vmul.f32 %v2290_v54, %v2290_v54 }
 0x1a2   : > { %781 = vmatprep.mubr.f32.mxu1 %v2292_v55  ;;  %v711_v26 = vmul.f32 %v2292_v55, %v2292_v55 }
 0x1a3   : > { %782 = vmatmul.mubr.f32.gmra.mrb[2].mxu1 %v2290_v54 }
 0x1a4   : > { %786 = vmatprep.mubr.f32.mxu1 %v709_v13 }
 0x1a7   : > { %787 = vmatmul.mubr.f32.gmra.mrb[4].mxu1 %v708_v14 }
 0x1a8   : > { %791 = vmatprep.mubr.f32.mxu1 %v711_v26 }
 0x1ab   : > { %792 = vmatmul.mubr.f32.gmra.mrb[6].mxu1 %v710_v27 }
 0x272   : > { %v1531_v41 = vpop.f32.mrb[0].mxu1 }
 0x273   : > { %v1532_v44 = vpop.f32.mrb[1].mxu1 }
 0x274   : > { %v1533_v47 = vadd.f32 %v1532_v44, %v1531_v41 }
 0x276   : > { %v1534_v50 = vpop.f32.mrb[2].mxu1  ;;  %1485 = vmatmul.mubr.msk.f32.vlgmr.msra.gmra.mrb[4].mxu0 %vm622_vm0, %v1533_v47  ;;  %v797_v60 = vmul.f32 %v1533_v47, %v1533_v47 }
 0x277   : > { %v1535_v51 = vpop.f32.mrb[3].mxu1  ;;  %887 = vmatprep.mubr.f32.mxu0 %v1776_v2  ;;  %1698 = vmatpush3.bf16.msra.mxu0 %v1947_v11 }
 0x278   : > { %v1536_v56 = vadd.f32 %v1535_v51, %v1534_v50  ;;  %1700 = vmatprep.subr.bf16.mxu0 %v1959_v15 }
 0x27a   : > { %v1537_v57 = vpop.f32.mrb[4].mxu1  ;;  %1486 = vmatmul.mubr.msk.f32.gmra.mrb[6].mxu0 %vm622_vm0, %v1536_v56  ;;  %v798_v11 = vmul.f32 %v1536_v56, %v1536_v56 }
 0x27b   : > { %v1538_v7 = vpop.f32.mrb[5].mxu1  ;;  %893 = vmatprep.mubr.f32.mxu0 %v1776_v2  ;;  %1702 = vmatpush3.bf16.msra.mxu0 %v1968_v18 }
 0x27c   : > { %v1539_v63 = vadd.f32 %v1538_v7, %v1537_v57  ;;  %1704 = vmatprep.subr.bf16.mxu0 %v1971_v19 }
 0x27e   : > { %v799_v3 = vsub.f32 %v1539_v63, %v797_v60  ;;  %v1540_v5 = vpop.f32.mrb[6].mxu1 }
 0x27f   : > { %v1541_v8 = vpop.f32.mrb[7].mxu1  ;;  %1706 = vmatpush3.bf16.msra.mxu0 %v1986_v24 }
 0x280   : > { %v801_v13 = vadd.f32 1e-05, %v799_v3  ;;  %v1542_v15 = vadd.f32 %v1541_v8, %v1540_v5  ;;  %1708 = vmatprep.subr.bf16.mxu0 %v1989_v25 }
 0x282   : > { %1748 = vrsqrt.f32 %v801_v13  ;;  %v800_v14 = vsub.f32 %v1542_v15, %v798_v11 }
 0x283   : > { %1710 = vmatpush3.bf16.msra.mxu0 %v2004_v30 }
 0x284   : > { %v802_v26 = vadd.f32 1e-05, %v800_v14  ;;  %1712 = vmatprep.subr.bf16.mxu0 %v2007_v31 }
 0x286   : > { %1750 = vrsqrt.f32 %v802_v26 }
 0x287   : > { %1714 = vmatpush3.bf16.msra.mxu0 %v2022_v36 }
 0x288   : > { %1716 = vmatprep.subr.bf16.mxu0 %v2025_v37 }
 0x28b   : > { %1718 = vmatpush3.bf16.msra.mxu0 %v2040_v42 }
 0x28c   : > { %v1749_v18 = vpop.eup %1748  ;;  %1720 = vmatprep.subr.bf16.mxu0 %v2043_v43 }
 0x28d   : > { %1487 = vmatmul.mubr.msk.f32.gmra.mrb[8].mxu0 %vm622_vm0, %v1749_v18 }
 0x28e   : > { %899 = vmatprep.mubr.f32.mxu0 %v1776_v2 }
 0x28f   : > { %1722 = vmatpush3.bf16.msra.mxu0 %v2058_v48  ;;  %v706_v48 = vld [vmem:[%s2598_s6] sm:$0x3] }
 0x290   : > { %v1751_v19 = vpop.eup %1750  ;;  %1724 = vmatprep.subr.bf16.mxu0 %v2061_v49  ;;  %v707_v49 = vld [vmem:[%s2599_s7] sm:$0x3]  ;;  %v922_v27 = vrot.slane %v706_v48, %v2100_v6 }
 0x291   : > { %1488 = vmatmul.mubr.msk.f32.gmra.mrb[10].mxu0 %vm622_vm0, %v1751_v19  ;;  %v933_v28 = vrot.slane %v707_v49, %v2070_v53 }
 0x293   : > { %1726 = vmatpush3.bf16.msra.mxu0 %v2281_v9  ;;  %v918_v9 = vrot.slane %v706_v48, %v2070_v53 }
 0x349   : > { %v883_v24 = vpop.f32.mrb[4].mxu0 }
 0x34a   : > { %v906_v25 = vsub.f32 %v2284_v10, %v883_v24  ;;  %v885_v30 = vpop.f32.mrb[5].mxu0 }
 0x34b   : > { %v907_v31 = vsub.f32 %v2286_v12, %v885_v30 }
 0x34d   : > { %v889_v36 = vpop.f32.mrb[6].mxu0 }
 0x34e   : > { %v908_v37 = vsub.f32 %v2290_v54, %v889_v36  ;;  %v891_v42 = vpop.f32.mrb[7].mxu0 }
 0x34f   : > { %v909_v43 = vsub.f32 %v2292_v55, %v891_v42  ;;  %v937_v55 = vrot.slane %v707_v49, %v2100_v6 }
 0x360   : > { %v895_v10 = vpop.f32.mrb[8].mxu0 }
 0x361   : > { %v910_v12 = vmul.f32 %v906_v25, %v895_v10  ;;  %v897_v54 = vpop.f32.mrb[9].mxu0 }
 0x362   : > { %v911_v29 = vmul.f32 %v907_v31, %v897_v54 }
 0x363   : > { %v925_v39 = vmul.f32 %v918_v9, %v910_v12 }
 0x364   : > { %v926_v40 = vmul.f32 %v922_v27, %v911_v29  ;;  %v901_v41 = vpop.f32.mrb[10].mxu0 }
 0x365   : > { %v940_v44 = vadd.f32 %v933_v28, %v925_v39  ;;  %v912_v47 = vmul.f32 %v908_v37, %v901_v41  ;;  %v903_v50 = vpop.f32.mrb[11].mxu0 }
 0x366   : > { %v941_v51 = vadd.f32 %v937_v55, %v926_v40  ;;  %v913_v56 = vmul.f32 %v909_v43, %v903_v50 }
 0x367   : > { %v944_v57 = vmax.f32 %v940_v44, 0.0  ;;  %v927_v7 = vmul.f32 %v918_v9, %v912_v47 }
 0x368   : > { %v928_v60 = vmul.f32 %v922_v27, %v913_v56  ;;  %v945_v3 = vmax.f32 %v941_v51, 0.0 }
 0x369   : > { %v942_v63 = vadd.f32 %v933_v28, %v927_v7  ;;  %952 = vrot.lane.b32.xlu0 %v944_v57, %s1768_s19  ;;  %v2364_v13 = vmul.f32 %v944_v57, %v2160_v23 }
 0x36a   : > { %v943_v5 = vadd.f32 %v937_v55, %v928_v60  ;;  %v2370_v14 = vmul.f32 %v945_v3, %v2150_v16 }
 0x36b   : > { %v946_v8 = vmax.f32 %v942_v63, 0.0 }
 0x36c   : > { %v947_v11 = vmax.f32 %v943_v5, 0.0 }
 0x36d   : > { %968 = vrot.lane.b32.xlu0 %v944_v57, %s1769_s20  ;;  %954 = vrot.lane.b32.xlu1 %v946_v8, %s1768_s19  ;;  %v2367_v15 = vmul.f32 %v946_v8, %v2160_v23 }
 0x36e   : > { %v2373_v26 = vmul.f32 %v947_v11, %v2150_v16  ;;  %v949_v16 = vld [vmem:[%s2594_s2 + $0x8] sm:$0xff] }
 0x36f   : > { %v1677_v18 = vpack.c.bf16 %v2367_v15, %v2364_v13  ;;  %1489 = vmatprep.mubr.msk.f32.mxu1 %vm622_vm0, %v949_v16 }
 0x370   : > { %v1675_v19 = vpack.c.bf16 %v2373_v26, %v2370_v14 }
 0x371   : > { %984 = vrot.lane.b32.xlu0 %v944_v57, %s1770_s21  ;;  %970 = vrot.lane.b32.xlu1 %v946_v8, %s1769_s20 }
 0x375   : > { %1000 = vrot.lane.b32.xlu0 %v944_v57, %s1771_s22  ;;  %986 = vrot.lane.b32.xlu1 %v946_v8, %s1770_s21 }
 0x379   : > { %1020 = vrot.lane.b32.xlu0 %v944_v57, %s1772_s23  ;;  %1002 = vrot.lane.b32.xlu1 %v946_v8, %s1771_s22 }
 0x37d   : > { %1036 = vrot.lane.b32.xlu0 %v944_v57, %s1773_s24  ;;  %1022 = vrot.lane.b32.xlu1 %v946_v8, %s1772_s23 }
 0x381   : > { %1052 = vrot.lane.b32.xlu0 %v944_v57, %s1774_s25  ;;  %1038 = vrot.lane.b32.xlu1 %v946_v8, %s1773_s24 }
 0x385   : > { %956 = vrot.lane.b32.xlu0 %v945_v3, %s1768_s19  ;;  %1054 = vrot.lane.b32.xlu1 %v946_v8, %s1774_s25 }
 0x389   : > { %972 = vrot.lane.b32.xlu0 %v945_v3, %s1769_s20  ;;  %958 = vrot.lane.b32.xlu1 %v947_v11, %s1768_s19 }
 0x38d   : > { %988 = vrot.lane.b32.xlu0 %v945_v3, %s1770_s21  ;;  %974 = vrot.lane.b32.xlu1 %v947_v11, %s1769_s20 }
 0x391   : > { %1004 = vrot.lane.b32.xlu0 %v945_v3, %s1771_s22  ;;  %990 = vrot.lane.b32.xlu1 %v947_v11, %s1770_s21 }
 0x395   : > { %1068 = vrot.lane.b32.xlu0 %v944_v57, %s2606_s29  ;;  %1006 = vrot.lane.b32.xlu1 %v947_v11, %s1771_s22 }
 0x399   : > { %1024 = vrot.lane.b32.xlu0 %v945_v3, %s1772_s23  ;;  %1070 = vrot.lane.b32.xlu1 %v946_v8, %s2606_s29 }
 0x39d   : > { %1040 = vrot.lane.b32.xlu0 %v945_v3, %s1773_s24  ;;  %1026 = vrot.lane.b32.xlu1 %v947_v11, %s1772_s23 }
 0x3a1   : > { %1056 = vrot.lane.b32.xlu0 %v945_v3, %s1774_s25  ;;  %1042 = vrot.lane.b32.xlu1 %v947_v11, %s1773_s24 }
 0x3a5   : > { %1072 = vrot.lane.b32.xlu0 %v945_v3, %s2606_s29  ;;  %1058 = vrot.lane.b32.xlu1 %v947_v11, %s1774_s25 }
 0x3a9   : > { %1074 = vrot.lane.b32.xlu1 %v947_v11, %s2606_s29 }
 0x3db   : > { %v953_v23 = vpop.permute.xlu0 %952 }
 0x3df   : > { %v969_v24 = vpop.permute.xlu0 %968  ;;  %v955_v25 = vpop.permute.xlu1 %954 }
 0x3e3   : > { %v985_v30 = vpop.permute.xlu0 %984  ;;  %v971_v31 = vpop.permute.xlu1 %970 }
 0x3e7   : > { %v1001_v36 = vpop.permute.xlu0 %1000  ;;  %v987_v37 = vpop.permute.xlu1 %986 }
 0x3eb   : > { %v2412_v42 = vpop.permute.xlu0 %1020  ;;  %v1003_v43 = vpop.permute.xlu1 %1002 }
 0x3ef   : > { %v2414_v48 = vpop.permute.xlu0 %1036  ;;  %v2416_v49 = vpop.permute.xlu1 %1022 }
 0x3f3   : > { %v2418_v9 = vpop.permute.xlu0 %1052  ;;  %v2420_v10 = vpop.permute.xlu1 %1038 }
 0x3f7   : > { %v957_v27 = vpop.permute.xlu0 %956  ;;  %v2422_v12 = vpop.permute.xlu1 %1054 }
 0x3f8   : > { %v960_v28 = vsel %vm418_vm1, %v953_v23, %v957_v27  ;;  %v962_v54 = vsel %vm418_vm1, %v957_v27, %v953_v23 }
 0x3f9   : > { %v964_v41 = vmul.f32 %v962_v54, %v2085_v58  ;;  %v965_v44 = vmul.f32 %v960_v28, %v2089_v59 }
 0x3fb   : > { %v973_v29 = vpop.permute.xlu0 %972  ;;  %v959_v55 = vpop.permute.xlu1 %958 }
 0x3fc   : > { %v961_v39 = vsel %vm418_vm1, %v955_v25, %v959_v55  ;;  %v963_v40 = vsel %vm418_vm1, %v959_v55, %v955_v25  ;;  %v976_v51 = vsel %vm443_vm2, %v969_v24, %v973_v29  ;;  %v978_v56 = vsel %vm443_vm2, %v973_v29, %v969_v24 }
 0x3fd   : > { %v966_v47 = vmul.f32 %v963_v40, %v2085_v58  ;;  %v967_v50 = vmul.f32 %v961_v39, %v2089_v59  ;;  %v980_v58 = vmul.f32 %v978_v56, %v2109_v20  ;;  %v981_v59 = vmul.f32 %v976_v51, %v2113_v21 }
 0x3ff   : > { %v1661_v57 = vpack.c.bf16 %v966_v47, %v964_v41  ;;  %v989_v7 = vpop.permute.xlu0 %988  ;;  %v975_v60 = vpop.permute.xlu1 %974  ;;  %v1659_v63 = vpack.c.bf16 %v967_v50, %v965_v44 }
 0x400   : > { %v977_v3 = vsel %vm443_vm2, %v971_v31, %v975_v60  ;;  %v979_v5 = vsel %vm443_vm2, %v975_v60, %v971_v31  ;;  %v992_v16 = vsel %vm468_vm3, %v985_v30, %v989_v7  ;;  %v994_v23 = vsel %vm468_vm3, %v989_v7, %v985_v30 }
 0x401   : > { %v982_v8 = vmul.f32 %v979_v5, %v2109_v20  ;;  %v983_v11 = vmul.f32 %v977_v3, %v2113_v21  ;;  %1660 = vmatprep.subr.bf16.mxu1 %v1659_v63  ;;  %v996_v21 = vmul.f32 %v994_v23, %v2130_v45  ;;  %v997_v54 = vmul.f32 %v992_v16, %v2133_v46 }
 0x402   : > { %1662 = vmatpush1.bf16.msra.mxu1 %v1661_v57 }
 0x403   : > { %v1665_v24 = vpack.c.bf16 %v982_v8, %v980_v58  ;;  %v1005_v25 = vpop.permute.xlu0 %1004  ;;  %v991_v27 = vpop.permute.xlu1 %990  ;;  %v1663_v31 = vpack.c.bf16 %v983_v11, %v981_v59 }
 0x404   : > { %v993_v28 = vsel %vm468_vm3, %v987_v37, %v991_v27  ;;  %v995_v20 = vsel %vm468_vm3, %v991_v27, %v987_v37  ;;  %v1008_v30 = vsel %vm493_vm4, %v1001_v36, %v1005_v25  ;;  %v1010_v39 = vsel %vm493_vm4, %v1005_v25, %v1001_v36 }
 0x405   : > { %v998_v29 = vmul.f32 %v995_v20, %v2130_v45  ;;  %v999_v55 = vmul.f32 %v993_v28, %v2133_v46  ;;  %1664 = vmatprep.subr.bf16.mxu1 %v1663_v31  ;;  %v1012_v46 = vmul.f32 %v1010_v39, %v2154_v17  ;;  %v1013_v50 = vmul.f32 %v1008_v30, %v2157_v22 }
 0x406   : > { %1666 = vmatpush1.bf16.msra.mxu1 %v1665_v24 }
 0x407   : > { %v1669_v40 = vpack.c.bf16 %v998_v29, %v996_v21  ;;  %v1069_v41 = vpop.permute.xlu0 %1068  ;;  %v1007_v44 = vpop.permute.xlu1 %1006  ;;  %v1667_v37 = vpack.c.bf16 %v999_v55, %v997_v54 }
 0x408   : > { %v1009_v47 = vsel %vm493_vm4, %v1003_v43, %v1007_v44  ;;  %v1011_v45 = vsel %vm493_vm4, %v1007_v44, %v1003_v43 }
 0x409   : > { %v1014_v51 = vmul.f32 %v1011_v45, %v2154_v17  ;;  %v1015_v56 = vmul.f32 %v1009_v47, %v2157_v22  ;;  %1668 = vmatprep.subr.bf16.mxu1 %v1667_v37  ;;  %v948_v45 = vld [vmem:[%s2594_s2] sm:$0xff] }
 0x40a   : > { %1670 = vmatpush1.bf16.msra.mxu1 %v1669_v40 }
 0x40b   : > { %v1673_v36 = vpack.c.bf16 %v1014_v51, %v1012_v46  ;;  %v1025_v57 = vpop.permute.xlu0 %1024  ;;  %v1071_v7 = vpop.permute.xlu1 %1070  ;;  %v1671_v60 = vpack.c.bf16 %v1015_v56, %v1013_v50 }
 0x40c   : > { %v1028_v63 = vsel %vm530_vm5, %v2412_v42, %v1025_v57  ;;  %v1030_v43 = vsel %vm530_vm5, %v1025_v57, %v2412_v42 }
 0x40d   : > { %1672 = vmatprep.subr.bf16.mxu1 %v1671_v60  ;;  %v1032_v58 = vmul.f32 %v1028_v63, %v2185_v61  ;;  %v1033_v59 = vmul.f32 %v1030_v43, %v2188_v62 }
 0x40e   : > { %1674 = vmatpush1.bf16.msra.mxu1 %v1673_v36 }
 0x40f   : > { %v1041_v3 = vpop.permute.xlu0 %1040  ;;  %v1027_v17 = vpop.permute.xlu1 %1026  ;;  %1676 = vmatprep.subr.bf16.mxu1 %v1675_v19 }
 0x410   : > { %v1029_v22 = vsel %vm530_vm5, %v2416_v49, %v1027_v17  ;;  %v1031_v5 = vsel %vm530_vm5, %v1027_v17, %v2416_v49  ;;  %v1044_v14 = vsel %vm555_vm6, %v2414_v48, %v1041_v3  ;;  %v1046_v26 = vsel %vm555_vm6, %v1041_v3, %v2414_v48 }
 0x411   : > { %v1034_v42 = vmul.f32 %v1029_v22, %v2185_v61  ;;  %v1035_v8 = vmul.f32 %v1031_v5, %v2188_v62  ;;  %v1048_v23 = vmul.f32 %v1044_v14, %v2205_v33  ;;  %v1049_v48 = vmul.f32 %v1046_v26, %v2208_v34 }
 0x412   : > { %1678 = vmatpush1.bf16.msra.mxu1 %v1677_v18 }
 0x413   : > { %v1681_v19 = vpack.c.bf16 %v1034_v42, %v1032_v58  ;;  %v1057_v49 = vpop.permute.xlu0 %1056  ;;  %v1043_v11 = vpop.permute.xlu1 %1042  ;;  %v1679_v16 = vpack.c.bf16 %v1035_v8, %v1033_v59 }
 0x414   : > { %v1045_v61 = vsel %vm555_vm6, %v2420_v10, %v1043_v11  ;;  %v1047_v62 = vsel %vm555_vm6, %v1043_v11, %v2420_v10  ;;  %v1060_v15 = vsel %vm580_vm7, %v2418_v9, %v1057_v49  ;;  %v1062_v18 = vsel %vm580_vm7, %v1057_v49, %v2418_v9 }
 0x415   : > { %v1050_v24 = vmul.f32 %v1045_v61, %v2205_v33  ;;  %v1051_v13 = vmul.f32 %v1047_v62, %v2208_v34  ;;  %1680 = vmatprep.subr.bf16.mxu1 %v1679_v16  ;;  %v1064_v28 = vmul.f32 %v1060_v15, %v2225_v1  ;;  %v1065_v20 = vmul.f32 %v1062_v18, %v2228_v4 }
 0x416   : > { %1682 = vmatpush1.bf16.msra.mxu1 %v1681_v19 }
 0x417   : > { %v1685_v25 = vpack.c.bf16 %v1050_v24, %v1048_v23  ;;  %v1073_v10 = vpop.permute.xlu0 %1072  ;;  %v1059_v27 = vpop.permute.xlu1 %1058  ;;  %v1683_v31 = vpack.c.bf16 %v1051_v13, %v1049_v48 }
 0x418   : > { %v1061_v33 = vsel %vm580_vm7, %v2422_v12, %v1059_v27  ;;  %v1063_v34 = vsel %vm580_vm7, %v1059_v27, %v2422_v12  ;;  %v1076_v54 = vsel %vm605_vm8, %v1069_v41, %v1073_v10  ;;  %v1078_v29 = vsel %vm605_vm8, %v1073_v10, %v1069_v41  ;;  %v1167_v10 = vld [vmem:[%s2600_s8] sm:$0x3] }
 0x419   : > { %v1066_v21 = vmul.f32 %v1061_v33, %v2225_v1  ;;  %v1067_v9 = vmul.f32 %v1063_v34, %v2228_v4  ;;  %1684 = vmatprep.subr.bf16.mxu1 %v1683_v31  ;;  %v1080_v1 = vmul.f32 %v2246_v32, %v1076_v54  ;;  %v1081_v4 = vmul.f32 %v2251_v35, %v1078_v29 }
 0x41a   : > { %1686 = vmatpush1.bf16.msra.mxu1 %v1685_v25  ;;  %v1379_v27 = vrot.slane %v1167_v10, %v2070_v53  ;;  %v1383_v33 = vrot.slane %v1167_v10, %v2100_v6 }
 0x41b   : > { %v1689_v55 = vpack.c.bf16 %v1066_v21, %v1064_v28  ;;  %v1075_v30 = vpop.permute.xlu1 %1074  ;;  %v1687_v39 = vpack.c.bf16 %v1067_v9, %v1065_v20 }
 0x41c   : > { %v1077_v12 = vsel %vm605_vm8, %v1071_v7, %v1075_v30  ;;  %v1079_v40 = vsel %vm605_vm8, %v1075_v30, %v1071_v7 }
 0x41d   : > { %v1082_v44 = vmul.f32 %v2246_v32, %v1077_v12  ;;  %v1083_v37 = vmul.f32 %v2251_v35, %v1079_v40  ;;  %1688 = vmatprep.subr.bf16.mxu1 %v1687_v39  ;;  %v950_v32 = vld [vmem:[%s2594_s2 + $0x10] sm:$0xff] }
 0x41e   : > { %1690 = vmatpush1.bf16.msra.mxu1 %v1689_v55 }
 0x41f   : > { %v1693_v41 = vpack.c.bf16 %v1082_v44, %v1080_v1  ;;  %v1691_v47 = vpack.c.bf16 %v1083_v37, %v1081_v4  ;;  %v1756_v37 = vld [vmem:[%s1848_s18] sm:$0xff] }
 0x421   : > { %1692 = vmatprep.subr.bf16.mxu1 %v1691_v47 }
 0x422   : > { %1694 = vmatpush1.bf16.msra.mxu1 %v1693_v41 }
 0x423   : > { %1728 = vmatprep.subr.bf16.mxu1 %v2310_v38 }
 0x425   : > { %1155 = vmatmul.mubr.f32.vlgmr.msra.gmra.mrb[8].mxu1 %v948_v45  ;;  %v1757_v45 = vld [vmem:[%s1848_s18 + $0x8] sm:$0xff] }
 0x426   : > { %1490 = vmatprep.mubr.msk.f32.mxu1 %vm622_vm0, %v951_v52  ;;  %1730 = vmatpush1.bf16.msra.mxu1 %v2318_v0 }
 0x429   : > { %1161 = vmatmul.mubr.f32.gmra.mrb[10].mxu1 %v950_v32 }
 0x42a   : > { %1342 = vmatprep.mubr.f32.mxu1 %v1776_v2 }
 0x4f8   : > { %v1156_v35 = vpop.f32.mrb[8].mxu1 }
 0x4f9   : > { %v1158_v46 = vpop.f32.mrb[9].mxu1  ;;  %v1169_v56 = vmul.f32 %v1156_v35, %v1156_v35 }
 0x4fa   : > { %1237 = vmatprep.mubr.f32.mxu0 %v1158_v46  ;;  %v1170_v38 = vmul.f32 %v1158_v46, %v1158_v46 }
 0x4fb   : > { %1238 = vmatmul.mubr.f32.vlgmr.msra.gmra.mrb[12].mxu0 %v1156_v35 }
 0x4fc   : > { %v2551_v50 = vpop.f32.mrb[10].mxu1 }
 0x4fd   : > { %v2553_v51 = vpop.f32.mrb[11].mxu1  ;;  %v1171_v36 = vmul.f32 %v2551_v50, %v2551_v50 }
 0x4fe   : > { %1242 = vmatprep.mubr.f32.mxu0 %v2553_v51  ;;  %v1172_v0 = vmul.f32 %v2553_v51, %v2553_v51 }
 0x4ff   : > { %1243 = vmatmul.mubr.f32.gmra.mrb[14].mxu0 %v2551_v50 }
 0x500   : > { %1247 = vmatprep.mubr.f32.mxu0 %v1170_v38  ;;  %v1759_v38 = vld [vmem:[%s1848_s18 + $0x18] sm:$0xff] }
 0x503   : > { %1248 = vmatmul.mubr.f32.gmra.mrb[16].mxu0 %v1169_v56 }
 0x504   : > { %1252 = vmatprep.mubr.f32.mxu0 %v1172_v0 }
 0x507   : > { %1253 = vmatmul.mubr.f32.gmra.mrb[18].mxu0 %v1171_v36 }
 0x5ce   : > { %v1575_v57 = vpop.f32.mrb[12].mxu0 }
 0x5cf   : > { %v1576_v7 = vpop.f32.mrb[13].mxu0 }
 0x5d0   : > { %v1577_v60 = vadd.f32 %v1576_v7, %v1575_v57 }
 0x5d2   : > { %v1578_v63 = vpop.f32.mrb[14].mxu0  ;;  %1491 = vmatmul.mubr.msk.f32.vlgmr.msra.gmra.mrb[12].mxu1 %vm622_vm0, %v1577_v60  ;;  %v1258_v5 = vmul.f32 %v1577_v60, %v1577_v60 }
 0x5d3   : > { %v1579_v43 = vpop.f32.mrb[15].mxu0  ;;  %1348 = vmatprep.mubr.f32.mxu1 %v1776_v2 }
 0x5d4   : > { %v1580_v3 = vadd.f32 %v1579_v43, %v1578_v63 }
 0x5d6   : > { %v1581_v17 = vpop.f32.mrb[16].mxu0  ;;  %1492 = vmatmul.mubr.msk.f32.gmra.mrb[14].mxu1 %vm622_vm0, %v1580_v3  ;;  %v1259_v14 = vmul.f32 %v1580_v3, %v1580_v3 }
 0x5d7   : > { %v1582_v22 = vpop.f32.mrb[17].mxu0  ;;  %1354 = vmatprep.mubr.f32.mxu1 %v1776_v2 }
 0x5d8   : > { %v1583_v58 = vadd.f32 %v1582_v22, %v1581_v17 }
 0x5da   : > { %v1260_v59 = vsub.f32 %v1583_v58, %v1258_v5  ;;  %v1584_v42 = vpop.f32.mrb[18].mxu0 }
 0x5db   : > { %v1585_v8 = vpop.f32.mrb[19].mxu0 }
 0x5dc   : > { %v1262_v26 = vadd.f32 1e-05, %v1260_v59  ;;  %v1586_v19 = vadd.f32 %v1585_v8, %v1584_v42 }
 0x5de   : > { %1752 = vrsqrt.f32 %v1262_v26  ;;  %v1261_v49 = vsub.f32 %v1586_v19, %v1259_v14 }
 0x5e0   : > { %v1263_v11 = vadd.f32 1e-05, %v1261_v49 }
 0x5e2   : > { %1754 = vrsqrt.f32 %v1263_v11 }
 0x5e8   : > { %v1753_v16 = vpop.eup %1752 }
 0x5e9   : > { %1493 = vmatmul.mubr.msk.f32.gmra.mrb[16].mxu1 %vm622_vm0, %v1753_v16 }
 0x5ea   : > { %1360 = vmatprep.mubr.f32.mxu1 %v1776_v2  ;;  %v1168_v2 = vld [vmem:[%s2601_s9] sm:$0x3] }
 0x5eb   : > { %v1394_v28 = vrot.slane %v1168_v2, %v2070_v53  ;;  %v1398_v9 = vrot.slane %v1168_v2, %v2100_v6 }
 0x5ec   : > { %v1755_v61 = vpop.eup %1754 }
 0x5ed   : > { %1494 = vmatmul.mubr.msk.f32.gmra.mrb[18].mxu1 %vm622_vm0, %v1755_v61 }
 0x6a5   : > { %v1344_v62 = vpop.f32.mrb[12].mxu1 }
 0x6a6   : > { %v1367_v23 = vsub.f32 %v1156_v35, %v1344_v62  ;;  %v1346_v48 = vpop.f32.mrb[13].mxu1 }
 0x6a7   : > { %v1368_v24 = vsub.f32 %v1158_v46, %v1346_v48 }
 0x6a9   : > { %v1350_v13 = vpop.f32.mrb[14].mxu1 }
 0x6aa   : > { %v1369_v15 = vsub.f32 %v2551_v50, %v1350_v13  ;;  %v1352_v18 = vpop.f32.mrb[15].mxu1  ;;  %v1758_v50 = vld [vmem:[%s1848_s18 + $0x10] sm:$0xff] }
 0x6ab   : > { %v1370_v25 = vsub.f32 %v2553_v51, %v1352_v18 }
 0x6bc   : > { %v1356_v31 = vpop.f32.mrb[16].mxu1 }
 0x6bd   : > { %v1371_v34 = vmul.f32 %v1367_v23, %v1356_v31  ;;  %v1358_v20 = vpop.f32.mrb[17].mxu1 }
 0x6be   : > { %v1372_v21 = vmul.f32 %v1368_v24, %v1358_v20 }
 0x6bf   : > { %v1386_v54 = vmul.f32 %v1379_v27, %v1371_v34 }
 0x6c0   : > { %v1387_v29 = vmul.f32 %v1383_v33, %v1372_v21  ;;  %v1362_v55 = vpop.f32.mrb[18].mxu1 }
 0x6c1   : > { %v1401_v30 = vadd.f32 %v1394_v28, %v1386_v54  ;;  %v1373_v39 = vmul.f32 %v1369_v15, %v1362_v55  ;;  %v1364_v12 = vpop.f32.mrb[19].mxu1 }
 0x6c2   : > { %v1402_v40 = vadd.f32 %v1398_v9, %v1387_v29  ;;  %v1374_v1 = vmul.f32 %v1370_v25, %v1364_v12 }
 0x6c3   : > { %v1405_v4 = vmax.f32 %v1401_v30, 0.0  ;;  %v1388_v44 = vmul.f32 %v1379_v27, %v1373_v39 }
 0x6c4   : > { %v1406_v53 = vmax.f32 %v1402_v40, 0.0  ;;  %v1389_v6 = vmul.f32 %v1383_v33, %v1374_v1 }
 0x6c5   : > { %v1409_v41 = vadd.f32 %v1756_v37, %v1405_v4  ;;  %v1403_v47 = vadd.f32 %v1394_v28, %v1388_v44 }
 0x6c6   : > { %v1410_v52 = vadd.f32 %v1757_v45, %v1406_v53  ;;  %v1404_v32 = vadd.f32 %v1398_v9, %v1389_v6 }
 0x6c7   : > { %1413 = vst [vmem:[%s359_s27] sm:$0xff] %v1409_v41  ;;  %v1407_v35 = vmax.f32 %v1403_v47, 0.0 }
 0x6c8   : > { %1414 = vst [vmem:[%s359_s27 + $0x8] sm:$0xff] %v1410_v52  ;;  %v1408_v46 = vmax.f32 %v1404_v32, 0.0 }
 0x6c9   : > { %v1411_v51 = vadd.f32 %v1758_v50, %v1407_v35 }
 0x6ca   : > { %v1412_v56 = vadd.f32 %v1759_v38, %v1408_v46 }
 0x6cb   : > { %1415 = vst [vmem:[%s359_s27 + $0x10] sm:$0xff] %v1411_v51 }
 0x6cc   : > { %1416 = vst [vmem:[%s359_s27 + $0x18] sm:$0xff] %v1412_v56 }
 0x6cd PF: > { %s20_s13 = sadd.s32 1, %s1766_s13  }
 0x6ce   : > { %p17_p4 = scmp.ge.s32.totalorder %s20_s13, 4  }
 0x6d0   :  { %19 = sbr.rel (!%p17_p4) target bundleno = 1 (0x1), region = 90 }

</bundles_post_ra>
